<compile_context>
chip_gen: v7x
topology: tpu7x:2x2x1
jax: 0.10.0
libtpu: 0.0.40
codegen_flags: <defaults>
</compile_context>

<pallas_src>
import jax
import jax.numpy as jnp
from jax import lax
from jax.experimental import pallas as pl
from jax.experimental.pallas import tpu as pltpu

EMB_DIM = 30
HIDDEN = 50
H_PAD = 128      # lane-aligned gate slab width (HIDDEN padded to 128 lanes)
LANE = 128


def _round_up(x, m):
    return (x + m - 1) // m * m


def _repack_gates(w):
    """Last dim 4*HIDDEN in torch order [i,f,g,o] -> 4*H_PAD in order [i,f,o,g],
    each gate slab zero-padded from HIDDEN to H_PAD lanes."""
    H = HIDDEN
    i = w[..., 0 * H:1 * H]
    f = w[..., 1 * H:2 * H]
    g = w[..., 2 * H:3 * H]
    o = w[..., 3 * H:4 * H]

    def pad(x):
        widths = [(0, 0)] * (x.ndim - 1) + [(0, H_PAD - H)]
        return jnp.pad(x, widths)

    return jnp.concatenate([pad(i), pad(f), pad(o), pad(g)], axis=-1)


def rnn2_kernel(pregates_ref, whh_ref, wout_ref, bout_ref, out_ref, h_hist):
    # pregates_ref: (T, 4*H_PAD)     x@Wih^T + b, gate order [i,f,o,g], lane-padded
    # whh_ref:      (H_PAD, 4*H_PAD) hidden->gate weights (padded rows/cols = 0)
    # wout_ref:     (H_PAD, D_PAD)   output projection (padded rows/cols = 0)
    # bout_ref:     (1, D_PAD)
    # out_ref:      (T, D_PAD)       scores (lane-dense slab)
    # h_hist:       (T_PAD, H_PAD)   VMEM scratch collecting h_t
    T = pregates_ref.shape[0]

    # Hoist loop-invariant weight load out of the serial recurrence.
    whh = whh_ref[...]

    h0 = jnp.zeros((1, H_PAD), jnp.float32)
    c0 = jnp.zeros((1, H_PAD), jnp.float32)

    def step(t, carry):
        h, c = carry
        gates = (pregates_ref[pl.ds(t, 1), :]
                 + jnp.dot(h, whh, preferred_element_type=jnp.float32))   # (1, 4*H_PAD)
        # Gate order [i, f, o, g]: one wide sigmoid + one tanh (2 EUP launches).
        ifo = jax.nn.sigmoid(gates[:, 0:3 * H_PAD])
        g_g = jnp.tanh(gates[:, 3 * H_PAD:4 * H_PAD])
        i_g = ifo[:, 0 * H_PAD:1 * H_PAD]
        f_g = ifo[:, 1 * H_PAD:2 * H_PAD]
        o_g = ifo[:, 2 * H_PAD:3 * H_PAD]
        # Padded lanes: pregates = 0 -> i=f=o=0.5, g=0 -> c,h stay exactly 0.
        c_new = f_g * c + i_g * g_g
        h_new = o_g * jnp.tanh(c_new)
        h_hist[pl.ds(t, 1), :] = h_new
        return (h_new, c_new)

    # T is small and static -> fully unroll so LLO schedules across steps.
    lax.fori_loop(0, T, step, (h0, c0), unroll=True)

    # Single lane-dense output projection + bias + store, off the serial chain.
    hs = h_hist[...][:T]                                           # (T, H_PAD)
    out_ref[...] = (jnp.dot(hs, wout_ref[...], preferred_element_type=jnp.float32)
                    + bout_ref[...])


def init_params(key, dict_size):
    k_emb, k1, k2, k3, k4, k5, k6 = jax.random.split(key, 7)
    bound = 1.0 / float(jnp.sqrt(jnp.float32(HIDDEN)))
    emb = jax.random.normal(k_emb, (dict_size, EMB_DIM), jnp.float32)
    w_ih = jax.random.uniform(k1, (4 * HIDDEN, EMB_DIM), jnp.float32, -bound, bound)
    w_hh = jax.random.uniform(k2, (4 * HIDDEN, HIDDEN), jnp.float32, -bound, bound)
    b_ih = jax.random.uniform(k3, (4 * HIDDEN,), jnp.float32, -bound, bound)
    b_hh = jax.random.uniform(k4, (4 * HIDDEN,), jnp.float32, -bound, bound)
    w_out = jax.random.uniform(k5, (dict_size, HIDDEN), jnp.float32, -bound, bound)
    b_out = jax.random.uniform(k6, (dict_size,), jnp.float32, -bound, bound)
    return dict(emb=emb, w_ih=w_ih, w_hh=w_hh, b_ih=b_ih, b_hh=b_hh,
                w_out=w_out, b_out=b_out)


def rnn2_forward(indices, params):
    T = int(indices.shape[0])
    dict_size = params["emb"].shape[0]
    D_pad = _round_up(dict_size, LANE)
    T_pad = _round_up(T, 8)

    # Glue (plain JAX): fold the input projection into the embedding table
    # once, then gather per index -> pregates for every timestep.
    wih_t = _repack_gates(params["w_ih"].T)                                # (E, 4*H_PAD)
    b = _repack_gates((params["b_ih"] + params["b_hh"])[None, :])          # (1, 4*H_PAD)
    fused_table = params["emb"] @ wih_t + b                                # (dict_size, 4*H_PAD)
    pregates = jnp.take(fused_table, indices, axis=0)                      # (T, 4*H_PAD)

    whh = _repack_gates(params["w_hh"].T)                                  # (H, 4*H_PAD)
    whh = jnp.pad(whh, ((0, H_PAD - HIDDEN), (0, 0)))                      # (H_PAD, 4*H_PAD)

    wout = jnp.pad(params["w_out"].T,
                   ((0, H_PAD - HIDDEN), (0, D_pad - dict_size)))          # (H_PAD, D_pad)
    bout = jnp.pad(params["b_out"], (0, D_pad - dict_size)).reshape(1, -1) # (1, D_pad)

    args = (pregates, whh, wout, bout)
    in_specs = [pl.BlockSpec(a.shape, lambda *_, nd=a.ndim: (0,) * nd)
                for a in args]

    out = pl.pallas_call(
        rnn2_kernel,
        out_shape=jax.ShapeDtypeStruct((T, D_pad), jnp.float32),
        in_specs=in_specs,
        out_specs=pl.BlockSpec((T, D_pad), lambda *_: (0, 0)),
        scratch_shapes=[pltpu.VMEM((T_pad, H_PAD), jnp.float32)],
    )(*args)
    # TODO(synk): for realistic dict_size / long T, tile D and chunk T with a
    # grid instead of one monolithic block (VMEM limits, esp. on v7x 64 MiB).
    return out[:, :dict_size]


def rnn2_reference(indices, params):
    """Pure-JAX reference (mirrors torch.nn.LSTM semantics, torch gate order)."""
    H = HIDDEN
    x_emb = jnp.take(params["emb"], indices, axis=0)
    wih_t = params["w_ih"].T
    whh_t = params["w_hh"].T
    b = params["b_ih"] + params["b_hh"]

    def step(carry, x_t):
        h, c = carry
        gates = x_t @ wih_t + h @ whh_t + b
        i = jax.nn.sigmoid(gates[0 * H:1 * H])
        f = jax.nn.sigmoid(gates[1 * H:2 * H])
        g = jnp.tanh(gates[2 * H:3 * H])
        o = jax.nn.sigmoid(gates[3 * H:4 * H])
        c = f * c + i * g
        h = o * jnp.tanh(c)
        return (h, c), h

    (_, _), hs = lax.scan(step, (jnp.zeros(H, jnp.float32),
                                 jnp.zeros(H, jnp.float32)), x_emb)
    return hs @ params["w_out"].T + params["b_out"]


if __name__ == "__main__":
    dict_size = 40   # vocabulary size
    seq_len = 8      # sequence length T

    key = jax.random.PRNGKey(0)
    k_params, k_idx = jax.random.split(key)
    params = init_params(k_params, dict_size)
    indices = jax.random.randint(k_idx, (seq_len,), 0, dict_size, dtype=jnp.int32)

    scores = rnn2_forward(indices, params)
    scores = jax.block_until_ready(scores)

    ref = jax.block_until_ready(rnn2_reference(indices, params))
    assert scores.shape == (seq_len, dict_size), scores.shape
    assert jnp.allclose(scores, ref, atol=1e-4, rtol=1e-4), \
        float(jnp.max(jnp.abs(scores - ref)))

    print("KERNEL_OK")
</pallas_src>

<mosaic_0001>
module attributes {stable_mosaic.version = 11 : i64} {
  func.func @rnn2_kernel(%arg0: memref<8x512xf32, #tpu.memory_space<vmem>>, %arg1: memref<128x512xf32, #tpu.memory_space<vmem>>, %arg2: memref<128x128xf32, #tpu.memory_space<vmem>>, %arg3: memref<1x128xf32, #tpu.memory_space<vmem>>, %arg4: memref<8x128xf32, #tpu.memory_space<vmem>>, %arg5: memref<8x128xf32, #tpu.memory_space<vmem>>) attributes {dimension_semantics = [], scalar_prefetch = 0 : i64, scratch_operands = 1 : i64, tpu.core_type = #tpu.core_type<tc>} {
    %c0 = arith.constant 0 : index
    %c0_0 = arith.constant 0 : index
    %0 = vector.load %arg1[%c0, %c0_0] : memref<128x512xf32, #tpu.memory_space<vmem>>, vector<128x512xf32>
    %cst = arith.constant 0.000000e+00 : f32
    %1 = vector.broadcast %cst : f32 to vector<1x128xf32>
    %cst_1 = arith.constant 0.000000e+00 : f32
    %2 = vector.broadcast %cst_1 : f32 to vector<1x128xf32>
    %c0_i32 = arith.constant 0 : i32
    %3 = arith.index_cast %c0_i32 : i32 to index
    %c0_2 = arith.constant 0 : index
    %4 = vector.load %arg0[%3, %c0_2] : memref<8x512xf32, #tpu.memory_space<vmem>>, vector<1x512xf32>
    %cst_3 = arith.constant dense<0.000000e+00> : vector<1x512xf32>
    %5 = tpu.matmul %1, %0, %cst_3 {dimension_numbers = #tpu.dot_dimension_numbers<[1], [0], [0], [1], [0, 0, 1, 1], [], []>} : vector<1x128xf32>, vector<128x512xf32>, vector<1x512xf32> -> vector<1x512xf32>
    %6 = arith.addf %4, %5 : vector<1x512xf32>
    %7 = vector.extract_strided_slice %6 {offsets = [0, 0], sizes = [1, 384], strides = [1, 1]} : vector<1x512xf32> to vector<1x384xf32>
    %8 = arith.negf %7 : vector<1x384xf32>
    %9 = math.exp %8 : vector<1x384xf32>
    %cst_4 = arith.constant 1.000000e+00 : f32
    %10 = vector.broadcast %cst_4 : f32 to vector<1x384xf32>
    %11 = arith.addf %10, %9 : vector<1x384xf32>
    %12 = arith.divf %10, %11 : vector<1x384xf32>
    %13 = vector.extract_strided_slice %6 {offsets = [0, 384], sizes = [1, 128], strides = [1, 1]} : vector<1x512xf32> to vector<1x128xf32>
    %14 = math.tanh %13 : vector<1x128xf32>
    %15 = vector.extract_strided_slice %12 {offsets = [0, 0], sizes = [1, 128], strides = [1, 1]} : vector<1x384xf32> to vector<1x128xf32>
    %16 = vector.extract_strided_slice %12 {offsets = [0, 128], sizes = [1, 128], strides = [1, 1]} : vector<1x384xf32> to vector<1x128xf32>
    %17 = vector.extract_strided_slice %12 {offsets = [0, 256], sizes = [1, 128], strides = [1, 1]} : vector<1x384xf32> to vector<1x128xf32>
    %18 = arith.mulf %16, %2 : vector<1x128xf32>
    %19 = arith.mulf %15, %14 : vector<1x128xf32>
    %20 = arith.addf %18, %19 : vector<1x128xf32>
    %21 = math.tanh %20 : vector<1x128xf32>
    %22 = arith.mulf %17, %21 : vector<1x128xf32>
    %23 = arith.index_cast %c0_i32 : i32 to index
    %c0_5 = arith.constant 0 : index
    %24 = vector.load %arg5[%23, %c0_5] : memref<8x128xf32, #tpu.memory_space<vmem>>, vector<1x128xf32>
    tpu.vector_store %arg5[%23, %c0_5], %22 {strides = array<i32>} : memref<8x128xf32, #tpu.memory_space<vmem>>, vector<1x128xf32>,
    %c1_i32 = arith.constant 1 : i32
    %25 = arith.index_cast %c1_i32 : i32 to index
    %c0_6 = arith.constant 0 : index
    %26 = vector.load %arg0[%25, %c0_6] : memref<8x512xf32, #tpu.memory_space<vmem>>, vector<1x512xf32>
    %cst_7 = arith.constant dense<0.000000e+00> : vector<1x512xf32>
    %27 = tpu.matmul %22, %0, %cst_7 {dimension_numbers = #tpu.dot_dimension_numbers<[1], [0], [0], [1], [0, 0, 1, 1], [], []>} : vector<1x128xf32>, vector<128x512xf32>, vector<1x512xf32> -> vector<1x512xf32>
    %28 = arith.addf %26, %27 : vector<1x512xf32>
    %29 = vector.extract_strided_slice %28 {offsets = [0, 0], sizes = [1, 384], strides = [1, 1]} : vector<1x512xf32> to vector<1x384xf32>
    %30 = arith.negf %29 : vector<1x384xf32>
    %31 = math.exp %30 : vector<1x384xf32>
    %cst_8 = arith.constant 1.000000e+00 : f32
    %32 = vector.broadcast %cst_8 : f32 to vector<1x384xf32>
    %33 = arith.addf %32, %31 : vector<1x384xf32>
    %34 = arith.divf %32, %33 : vector<1x384xf32>
    %35 = vector.extract_strided_slice %28 {offsets = [0, 384], sizes = [1, 128], strides = [1, 1]} : vector<1x512xf32> to vector<1x128xf32>
    %36 = math.tanh %35 : vector<1x128xf32>
    %37 = vector.extract_strided_slice %34 {offsets = [0, 0], sizes = [1, 128], strides = [1, 1]} : vector<1x384xf32> to vector<1x128xf32>
    %38 = vector.extract_strided_slice %34 {offsets = [0, 128], sizes = [1, 128], strides = [1, 1]} : vector<1x384xf32> to vector<1x128xf32>
    %39 = vector.extract_strided_slice %34 {offsets = [0, 256], sizes = [1, 128], strides = [1, 1]} : vector<1x384xf32> to vector<1x128xf32>
    %40 = arith.mulf %38, %20 : vector<1x128xf32>
    %41 = arith.mulf %37, %36 : vector<1x128xf32>
    %42 = arith.addf %40, %41 : vector<1x128xf32>
    %43 = math.tanh %42 : vector<1x128xf32>
    %44 = arith.mulf %39, %43 : vector<1x128xf32>
    %45 = arith.index_cast %c1_i32 : i32 to index
    %c0_9 = arith.constant 0 : index
    %46 = vector.load %arg5[%45, %c0_9] : memref<8x128xf32, #tpu.memory_space<vmem>>, vector<1x128xf32>
    tpu.vector_store %arg5[%45, %c0_9], %44 {strides = array<i32>} : memref<8x128xf32, #tpu.memory_space<vmem>>, vector<1x128xf32>,
    %c2_i32 = arith.constant 2 : i32
    %47 = arith.index_cast %c2_i32 : i32 to index
    %c0_10 = arith.constant 0 : index
    %48 = vector.load %arg0[%47, %c0_10] : memref<8x512xf32, #tpu.memory_space<vmem>>, vector<1x512xf32>
    %cst_11 = arith.constant dense<0.000000e+00> : vector<1x512xf32>
    %49 = tpu.matmul %44, %0, %cst_11 {dimension_numbers = #tpu.dot_dimension_numbers<[1], [0], [0], [1], [0, 0, 1, 1], [], []>} : vector<1x128xf32>, vector<128x512xf32>, vector<1x512xf32> -> vector<1x512xf32>
    %50 = arith.addf %48, %49 : vector<1x512xf32>
    %51 = vector.extract_strided_slice %50 {offsets = [0, 0], sizes = [1, 384], strides = [1, 1]} : vector<1x512xf32> to vector<1x384xf32>
    %52 = arith.negf %51 : vector<1x384xf32>
    %53 = math.exp %52 : vector<1x384xf32>
    %cst_12 = arith.constant 1.000000e+00 : f32
    %54 = vector.broadcast %cst_12 : f32 to vector<1x384xf32>
    %55 = arith.addf %54, %53 : vector<1x384xf32>
    %56 = arith.divf %54, %55 : vector<1x384xf32>
    %57 = vector.extract_strided_slice %50 {offsets = [0, 384], sizes = [1, 128], strides = [1, 1]} : vector<1x512xf32> to vector<1x128xf32>
    %58 = math.tanh %57 : vector<1x128xf32>
    %59 = vector.extract_strided_slice %56 {offsets = [0, 0], sizes = [1, 128], strides = [1, 1]} : vector<1x384xf32> to vector<1x128xf32>
    %60 = vector.extract_strided_slice %56 {offsets = [0, 128], sizes = [1, 128], strides = [1, 1]} : vector<1x384xf32> to vector<1x128xf32>
    %61 = vector.extract_strided_slice %56 {offsets = [0, 256], sizes = [1, 128], strides = [1, 1]} : vector<1x384xf32> to vector<1x128xf32>
    %62 = arith.mulf %60, %42 : vector<1x128xf32>
    %63 = arith.mulf %59, %58 : vector<1x128xf32>
    %64 = arith.addf %62, %63 : vector<1x128xf32>
    %65 = math.tanh %64 : vector<1x128xf32>
    %66 = arith.mulf %61, %65 : vector<1x128xf32>
    %67 = arith.index_cast %c2_i32 : i32 to index
    %c0_13 = arith.constant 0 : index
    %68 = vector.load %arg5[%67, %c0_13] : memref<8x128xf32, #tpu.memory_space<vmem>>, vector<1x128xf32>
    tpu.vector_store %arg5[%67, %c0_13], %66 {strides = array<i32>} : memref<8x128xf32, #tpu.memory_space<vmem>>, vector<1x128xf32>,
    %c3_i32 = arith.constant 3 : i32
    %69 = arith.index_cast %c3_i32 : i32 to index
    %c0_14 = arith.constant 0 : index
    %70 = vector.load %arg0[%69, %c0_14] : memref<8x512xf32, #tpu.memory_space<vmem>>, vector<1x512xf32>
    %cst_15 = arith.constant dense<0.000000e+00> : vector<1x512xf32>
    %71 = tpu.matmul %66, %0, %cst_15 {dimension_numbers = #tpu.dot_dimension_numbers<[1], [0], [0], [1], [0, 0, 1, 1], [], []>} : vector<1x128xf32>, vector<128x512xf32>, vector<1x512xf32> -> vector<1x512xf32>
    %72 = arith.addf %70, %71 : vector<1x512xf32>
    %73 = vector.extract_strided_slice %72 {offsets = [0, 0], sizes = [1, 384], strides = [1, 1]} : vector<1x512xf32> to vector<1x384xf32>
    %74 = arith.negf %73 : vector<1x384xf32>
    %75 = math.exp %74 : vector<1x384xf32>
    %cst_16 = arith.constant 1.000000e+00 : f32
    %76 = vector.broadcast %cst_16 : f32 to vector<1x384xf32>
    %77 = arith.addf %76, %75 : vector<1x384xf32>
    %78 = arith.divf %76, %77 : vector<1x384xf32>
    %79 = vector.extract_strided_slice %72 {offsets = [0, 384], sizes = [1, 128], strides = [1, 1]} : vector<1x512xf32> to vector<1x128xf32>
    %80 = math.tanh %79 : vector<1x128xf32>
    %81 = vector.extract_strided_slice %78 {offsets = [0, 0], sizes = [1, 128], strides = [1, 1]} : vector<1x384xf32> to vector<1x128xf32>
    %82 = vector.extract_strided_slice %78 {offsets = [0, 128], sizes = [1, 128], strides = [1, 1]} : vector<1x384xf32> to vector<1x128xf32>
    %83 = vector.extract_strided_slice %78 {offsets = [0, 256], sizes = [1, 128], strides = [1, 1]} : vector<1x384xf32> to vector<1x128xf32>
    %84 = arith.mulf %82, %64 : vector<1x128xf32>
    %85 = arith.mulf %81, %80 : vector<1x128xf32>
    %86 = arith.addf %84, %85 : vector<1x128xf32>
    %87 = math.tanh %86 : vector<1x128xf32>
    %88 = arith.mulf %83, %87 : vector<1x128xf32>
    %89 = arith.index_cast %c3_i32 : i32 to index
    %c0_17 = arith.constant 0 : index
    %90 = vector.load %arg5[%89, %c0_17] : memref<8x128xf32, #tpu.memory_space<vmem>>, vector<1x128xf32>
    tpu.vector_store %arg5[%89, %c0_17], %88 {strides = array<i32>} : memref<8x128xf32, #tpu.memory_space<vmem>>, vector<1x128xf32>,
    %c4_i32 = arith.constant 4 : i32
    %91 = arith.index_cast %c4_i32 : i32 to index
    %c0_18 = arith.constant 0 : index
    %92 = vector.load %arg0[%91, %c0_18] : memref<8x512xf32, #tpu.memory_space<vmem>>, vector<1x512xf32>
    %cst_19 = arith.constant dense<0.000000e+00> : vector<1x512xf32>
    %93 = tpu.matmul %88, %0, %cst_19 {dimension_numbers = #tpu.dot_dimension_numbers<[1], [0], [0], [1], [0, 0, 1, 1], [], []>} : vector<1x128xf32>, vector<128x512xf32>, vector<1x512xf32> -> vector<1x512xf32>
    %94 = arith.addf %92, %93 : vector<1x512xf32>
    %95 = vector.extract_strided_slice %94 {offsets = [0, 0], sizes = [1, 384], strides = [1, 1]} : vector<1x512xf32> to vector<1x384xf32>
    %96 = arith.negf %95 : vector<1x384xf32>
    %97 = math.exp %96 : vector<1x384xf32>
    %cst_20 = arith.constant 1.000000e+00 : f32
    %98 = vector.broadcast %cst_20 : f32 to vector<1x384xf32>
    %99 = arith.addf %98, %97 : vector<1x384xf32>
    %100 = arith.divf %98, %99 : vector<1x384xf32>
    %101 = vector.extract_strided_slice %94 {offsets = [0, 384], sizes = [1, 128], strides = [1, 1]} : vector<1x512xf32> to vector<1x128xf32>
    %102 = math.tanh %101 : vector<1x128xf32>
    %103 = vector.extract_strided_slice %100 {offsets = [0, 0], sizes = [1, 128], strides = [1, 1]} : vector<1x384xf32> to vector<1x128xf32>
    %104 = vector.extract_strided_slice %100 {offsets = [0, 128], sizes = [1, 128], strides = [1, 1]} : vector<1x384xf32> to vector<1x128xf32>
    %105 = vector.extract_strided_slice %100 {offsets = [0, 256], sizes = [1, 128], strides = [1, 1]} : vector<1x384xf32> to vector<1x128xf32>
    %106 = arith.mulf %104, %86 : vector<1x128xf32>
    %107 = arith.mulf %103, %102 : vector<1x128xf32>
    %108 = arith.addf %106, %107 : vector<1x128xf32>
    %109 = math.tanh %108 : vector<1x128xf32>
    %110 = arith.mulf %105, %109 : vector<1x128xf32>
    %111 = arith.index_cast %c4_i32 : i32 to index
    %c0_21 = arith.constant 0 : index
    %112 = vector.load %arg5[%111, %c0_21] : memref<8x128xf32, #tpu.memory_space<vmem>>, vector<1x128xf32>
    tpu.vector_store %arg5[%111, %c0_21], %110 {strides = array<i32>} : memref<8x128xf32, #tpu.memory_space<vmem>>, vector<1x128xf32>,
    %c5_i32 = arith.constant 5 : i32
    %113 = arith.index_cast %c5_i32 : i32 to index
    %c0_22 = arith.constant 0 : index
    %114 = vector.load %arg0[%113, %c0_22] : memref<8x512xf32, #tpu.memory_space<vmem>>, vector<1x512xf32>
    %cst_23 = arith.constant dense<0.000000e+00> : vector<1x512xf32>
    %115 = tpu.matmul %110, %0, %cst_23 {dimension_numbers = #tpu.dot_dimension_numbers<[1], [0], [0], [1], [0, 0, 1, 1], [], []>} : vector<1x128xf32>, vector<128x512xf32>, vector<1x512xf32> -> vector<1x512xf32>
    %116 = arith.addf %114, %115 : vector<1x512xf32>
    %117 = vector.extract_strided_slice %116 {offsets = [0, 0], sizes = [1, 384], strides = [1, 1]} : vector<1x512xf32> to vector<1x384xf32>
    %118 = arith.negf %117 : vector<1x384xf32>
    %119 = math.exp %118 : vector<1x384xf32>
    %cst_24 = arith.constant 1.000000e+00 : f32
    %120 = vector.broadcast %cst_24 : f32 to vector<1x384xf32>
    %121 = arith.addf %120, %119 : vector<1x384xf32>
    %122 = arith.divf %120, %121 : vector<1x384xf32>
    %123 = vector.extract_strided_slice %116 {offsets = [0, 384], sizes = [1, 128], strides = [1, 1]} : vector<1x512xf32> to vector<1x128xf32>
    %124 = math.tanh %123 : vector<1x128xf32>
    %125 = vector.extract_strided_slice %122 {offsets = [0, 0], sizes = [1, 128], strides = [1, 1]} : vector<1x384xf32> to vector<1x128xf32>
    %126 = vector.extract_strided_slice %122 {offsets = [0, 128], sizes = [1, 128], strides = [1, 1]} : vector<1x384xf32> to vector<1x128xf32>
    %127 = vector.extract_strided_slice %122 {offsets = [0, 256], sizes = [1, 128], strides = [1, 1]} : vector<1x384xf32> to vector<1x128xf32>
    %128 = arith.mulf %126, %108 : vector<1x128xf32>
    %129 = arith.mulf %125, %124 : vector<1x128xf32>
    %130 = arith.addf %128, %129 : vector<1x128xf32>
    %131 = math.tanh %130 : vector<1x128xf32>
    %132 = arith.mulf %127, %131 : vector<1x128xf32>
    %133 = arith.index_cast %c5_i32 : i32 to index
    %c0_25 = arith.constant 0 : index
    %134 = vector.load %arg5[%133, %c0_25] : memref<8x128xf32, #tpu.memory_space<vmem>>, vector<1x128xf32>
    tpu.vector_store %arg5[%133, %c0_25], %132 {strides = array<i32>} : memref<8x128xf32, #tpu.memory_space<vmem>>, vector<1x128xf32>,
    %c6_i32 = arith.constant 6 : i32
    %135 = arith.index_cast %c6_i32 : i32 to index
    %c0_26 = arith.constant 0 : index
    %136 = vector.load %arg0[%135, %c0_26] : memref<8x512xf32, #tpu.memory_space<vmem>>, vector<1x512xf32>
    %cst_27 = arith.constant dense<0.000000e+00> : vector<1x512xf32>
    %137 = tpu.matmul %132, %0, %cst_27 {dimension_numbers = #tpu.dot_dimension_numbers<[1], [0], [0], [1], [0, 0, 1, 1], [], []>} : vector<1x128xf32>, vector<128x512xf32>, vector<1x512xf32> -> vector<1x512xf32>
    %138 = arith.addf %136, %137 : vector<1x512xf32>
    %139 = vector.extract_strided_slice %138 {offsets = [0, 0], sizes = [1, 384], strides = [1, 1]} : vector<1x512xf32> to vector<1x384xf32>
    %140 = arith.negf %139 : vector<1x384xf32>
    %141 = math.exp %140 : vector<1x384xf32>
    %cst_28 = arith.constant 1.000000e+00 : f32
    %142 = vector.broadcast %cst_28 : f32 to vector<1x384xf32>
    %143 = arith.addf %142, %141 : vector<1x384xf32>
    %144 = arith.divf %142, %143 : vector<1x384xf32>
    %145 = vector.extract_strided_slice %138 {offsets = [0, 384], sizes = [1, 128], strides = [1, 1]} : vector<1x512xf32> to vector<1x128xf32>
    %146 = math.tanh %145 : vector<1x128xf32>
    %147 = vector.extract_strided_slice %144 {offsets = [0, 0], sizes = [1, 128], strides = [1, 1]} : vector<1x384xf32> to vector<1x128xf32>
    %148 = vector.extract_strided_slice %144 {offsets = [0, 128], sizes = [1, 128], strides = [1, 1]} : vector<1x384xf32> to vector<1x128xf32>
    %149 = vector.extract_strided_slice %144 {offsets = [0, 256], sizes = [1, 128], strides = [1, 1]} : vector<1x384xf32> to vector<1x128xf32>
    %150 = arith.mulf %148, %130 : vector<1x128xf32>
    %151 = arith.mulf %147, %146 : vector<1x128xf32>
    %152 = arith.addf %150, %151 : vector<1x128xf32>
    %153 = math.tanh %152 : vector<1x128xf32>
    %154 = arith.mulf %149, %153 : vector<1x128xf32>
    %155 = arith.index_cast %c6_i32 : i32 to index
    %c0_29 = arith.constant 0 : index
    %156 = vector.load %arg5[%155, %c0_29] : memref<8x128xf32, #tpu.memory_space<vmem>>, vector<1x128xf32>
    tpu.vector_store %arg5[%155, %c0_29], %154 {strides = array<i32>} : memref<8x128xf32, #tpu.memory_space<vmem>>, vector<1x128xf32>,
    %c7_i32 = arith.constant 7 : i32
    %157 = arith.index_cast %c7_i32 : i32 to index
    %c0_30 = arith.constant 0 : index
    %158 = vector.load %arg0[%157, %c0_30] : memref<8x512xf32, #tpu.memory_space<vmem>>, vector<1x512xf32>
    %cst_31 = arith.constant dense<0.000000e+00> : vector<1x512xf32>
    %159 = tpu.matmul %154, %0, %cst_31 {dimension_numbers = #tpu.dot_dimension_numbers<[1], [0], [0], [1], [0, 0, 1, 1], [], []>} : vector<1x128xf32>, vector<128x512xf32>, vector<1x512xf32> -> vector<1x512xf32>
    %160 = arith.addf %158, %159 : vector<1x512xf32>
    %161 = vector.extract_strided_slice %160 {offsets = [0, 0], sizes = [1, 384], strides = [1, 1]} : vector<1x512xf32> to vector<1x384xf32>
    %162 = arith.negf %161 : vector<1x384xf32>
    %163 = math.exp %162 : vector<1x384xf32>
    %cst_32 = arith.constant 1.000000e+00 : f32
    %164 = vector.broadcast %cst_32 : f32 to vector<1x384xf32>
    %165 = arith.addf %164, %163 : vector<1x384xf32>
    %166 = arith.divf %164, %165 : vector<1x384xf32>
    %167 = vector.extract_strided_slice %160 {offsets = [0, 384], sizes = [1, 128], strides = [1, 1]} : vector<1x512xf32> to vector<1x128xf32>
    %168 = math.tanh %167 : vector<1x128xf32>
    %169 = vector.extract_strided_slice %166 {offsets = [0, 0], sizes = [1, 128], strides = [1, 1]} : vector<1x384xf32> to vector<1x128xf32>
    %170 = vector.extract_strided_slice %166 {offsets = [0, 128], sizes = [1, 128], strides = [1, 1]} : vector<1x384xf32> to vector<1x128xf32>
    %171 = vector.extract_strided_slice %166 {offsets = [0, 256], sizes = [1, 128], strides = [1, 1]} : vector<1x384xf32> to vector<1x128xf32>
    %172 = arith.mulf %170, %152 : vector<1x128xf32>
    %173 = arith.mulf %169, %168 : vector<1x128xf32>
    %174 = arith.addf %172, %173 : vector<1x128xf32>
    %175 = math.tanh %174 : vector<1x128xf32>
    %176 = arith.mulf %171, %175 : vector<1x128xf32>
    %177 = arith.index_cast %c7_i32 : i32 to index
    %c0_33 = arith.constant 0 : index
    %178 = vector.load %arg5[%177, %c0_33] : memref<8x128xf32, #tpu.memory_space<vmem>>, vector<1x128xf32>
    tpu.vector_store %arg5[%177, %c0_33], %176 {strides = array<i32>} : memref<8x128xf32, #tpu.memory_space<vmem>>, vector<1x128xf32>,
    %c8_i32 = arith.constant 8 : i32
    %c0_34 = arith.constant 0 : index
    %c0_35 = arith.constant 0 : index
    %179 = vector.load %arg5[%c0_34, %c0_35] : memref<8x128xf32, #tpu.memory_space<vmem>>, vector<8x128xf32>
    %c0_36 = arith.constant 0 : index
    %c0_37 = arith.constant 0 : index
    %180 = vector.load %arg2[%c0_36, %c0_37] : memref<128x128xf32, #tpu.memory_space<vmem>>, vector<128x128xf32>
    %cst_38 = arith.constant dense<0.000000e+00> : vector<8x128xf32>
    %181 = tpu.matmul %179, %180, %cst_38 {dimension_numbers = #tpu.dot_dimension_numbers<[1], [0], [0], [1], [0, 0, 1, 1], [], []>} : vector<8x128xf32>, vector<128x128xf32>, vector<8x128xf32> -> vector<8x128xf32>
    %c0_39 = arith.constant 0 : index
    %c0_40 = arith.constant 0 : index
    %182 = vector.load %arg3[%c0_39, %c0_40] : memref<1x128xf32, #tpu.memory_space<vmem>>, vector<1x128xf32>
    %183 = vector.broadcast %182 : vector<1x128xf32> to vector<8x128xf32>
    %184 = arith.addf %181, %183 : vector<8x128xf32>
    %c0_41 = arith.constant 0 : index
    %c0_42 = arith.constant 0 : index
    %185 = vector.load %arg4[%c0_41, %c0_42] : memref<8x128xf32, #tpu.memory_space<vmem>>, vector<8x128xf32>
    tpu.vector_store %arg4[%c0_41, %c0_42], %184 {strides = array<i32>} : memref<8x128xf32, #tpu.memory_space<vmem>>, vector<8x128xf32>,
    return
  }
}

</mosaic_0001>

<bundles_post_ra>
// kernel: tpu_custom_call.1
= control target key start
LH: loop header
LB: loop body
LE: loop exit
PB: predicated region body
PF: predicated region fallthrough
CT: control target
= control target key end

     0   :  { %9 = vsyncpa [#allocation4], 0  ;;  %s3039_s0 = inlined_call_operand.hbm [shape: f32[8,512], index: 0, kind: input, shape index: {}]   ;;  %s3040_s1 = inlined_call_operand.hbm [shape: f32[128,512], index: 1, kind: input, shape index: {}]   ;;  %s3041_s2 = inlined_call_operand.hbm [shape: f32[128,128], index: 2, kind: input, shape index: {}]   ;;  %s3042_s3 = inlined_call_operand.vmem [shape: f32[1,128], index: 3, kind: input, shape index: {}]   ;;  %s3043_s4 = inlined_call_operand.hbm [shape: f32[8,128], index: 4, kind: output, shape index: {}]  }
   0x1   :  { %10 = vsyncpa [#allocation7], 0 }
   0x2   :  { %11 = vsyncpa [#allocation5], 0  ;;  %s2558_s15 = smov [#allocation6]   ;;  %s2464_s19 = scalar_lea.hbm %s3040_s1, 8192 }
   0x3   :  { %s27_s16 = sshll.u32 %s2558_s15, 4  ;;  %p2465_p0 = scmp.ne.s32.totalorder %s3040_s1, %s2464_s19  ;;  %s28_s16 = int_to_ptr.vmem [resolvable:$true] %s27_s16 }
   0x4   :  { %p2468_p1 = scmp.lt.u32.totalorder %s2464_s19, %s3040_s1 }
   0x6   :  { %p2470_p2 = pnand %p2468_p1, %p2465_p0 }
   0x8   :  { %2473 = shalt.err (!%p2470_p2)
}
   0x9   :  { %s2474_s24 = scalar_lea.vmem %s28_s16, 8192  ;;  %p2479_p4 = scmp.lt.s32.totalorder %s28_s16, %s28_s16 }
   0xa   :  { %p2475_p3 = scmp.ne.s32.totalorder %s28_s16, %s2474_s24  ;;  %p2480_p5 = scmp.lt.s32.totalorder %s2474_s24, %s2474_s24 }
   0xc   :  { %p2481_p6 = por %p2480_p5, %p2479_p4 }
   0xe   :  { %p2482_p7 = pnand %p2481_p6, %p2475_p3 }
  0x10   :  { %2485 = shalt.err (!%p2482_p7)
}
  0x11   :  { %s2559_s25 = smov 512   ;;  %s2560_s26 = smov 32  }
  0x12   :  { %33 = dma.hbm_to_vmem [thread:$0]  %s3040_s1, 8192, %s28_s16, [#allocation7], %s2559_s25, %s2559_s25, %s2560_s26  }
  0x13   :  { %s2561_s29 = smov [#allocation3]   ;;  %s2562_s5 = smov [#allocation8]  }
  0x14   :  { %s18_s30 = sshll.u32 %s2561_s29, 4  ;;  %s39_s6 = sshll.u32 %s2562_s5, 4  ;;  %s19_s30 = int_to_ptr.vmem [resolvable:$true] %s18_s30  ;;  %s40_s6 = int_to_ptr.vmem [resolvable:$true] %s39_s6 }
  0x15   :  { %s2486_s9 = scalar_lea.hbm %s3039_s0, 512 }
  0x16   :  { %p2487_p8 = scmp.ne.s32.totalorder %s3039_s0, %s2486_s9  ;;  %p2490_p9 = scmp.lt.u32.totalorder %s2486_s9, %s3039_s0 }
  0x18   :  { %p2492_p10 = pnand %p2490_p9, %p2487_p8 }
  0x1a   :  { %2495 = shalt.err (!%p2492_p10)
}
  0x1b   :  { %s2496_s1 = scalar_lea.vmem %s19_s30, 512  ;;  %p2501_p12 = scmp.lt.s32.totalorder %s19_s30, %s19_s30 }
  0x1c   :  { %p2497_p11 = scmp.ne.s32.totalorder %s19_s30, %s2496_s1  ;;  %p2502_p13 = scmp.lt.s32.totalorder %s2496_s1, %s2496_s1 }
  0x1e   :  { %p2503_p0 = por %p2502_p13, %p2501_p12 }
  0x20   :  { %p2504_p1 = pnand %p2503_p0, %p2497_p11 }
  0x22   :  { %2507 = shalt.err (!%p2504_p1)
}
  0x23   :  { %21 = dma.hbm_to_vmem [thread:$0]  %s3039_s0, 512, %s19_s30, [#allocation4]  }
  0x24   :  { %s2508_s18 = scalar_lea.hbm %s3041_s2, 2048 }
  0x25   :  { %p2509_p2 = scmp.ne.s32.totalorder %s3041_s2, %s2508_s18  ;;  %p2512_p3 = scmp.lt.u32.totalorder %s2508_s18, %s3041_s2 }
  0x27   :  { %p2514_p4 = pnand %p2512_p3, %p2509_p2 }
  0x29   :  { %2517 = shalt.err (!%p2514_p4)
}
  0x2a   :  { %s2518_s23 = scalar_lea.vmem %s40_s6, 2048  ;;  %p2523_p6 = scmp.lt.s32.totalorder %s40_s6, %s40_s6 }
  0x2b   :  { %p2519_p5 = scmp.ne.s32.totalorder %s40_s6, %s2518_s23  ;;  %p2524_p7 = scmp.lt.s32.totalorder %s2518_s23, %s2518_s23 }
  0x2d   :  { %p2525_p8 = por %p2524_p7, %p2523_p6 }
  0x2f   :  { %p2526_p9 = pnand %p2525_p8, %p2519_p5 }
  0x31   :  { %2529 = shalt.err (!%p2526_p9)
}
  0x32   :  { %s2563_s0 = smov 128   ;;  %s2564_s24 = smov 8  }
  0x33   :  { %45 = dma.hbm_to_vmem [thread:$0]  %s3041_s2, 2048, %s40_s6, [#allocation7], %s2563_s0, %s2563_s0, %s2564_s24  }
  0x34   :  { %2552 = dma.done.wait [#allocation4], 512  }
  0x35   :  { %2553 = vsyncadd [#allocation4], 4294966784 }
  0x36   :  { %2554 = dma.done.wait [#allocation7], 10240  }
  0x37   :  { %2555 = vsyncadd [#allocation7], 4294957056  ;;  %v2565_v0 = vmov 0.0   ;;  %v58_v1 = vld [vmem:[#allocation6 + $0x8] sm:$0xff]  ;;  %v60_v3 = vld [vmem:[#allocation6 + $0x18] sm:$0xff]  ;;  %vm2568_vm0 = vmmov 0  }
  0x38   :  { %186 = vmatprep.mubr.f32.mxu0 %v2565_v0  ;;  %257 = vmatprep.mubr.f32.mxu1 %v2565_v0  ;;  %v62_v2 = vld [vmem:[#allocation6 + $0x28] sm:$0xff]  ;;  %v64_v5 = vld [vmem:[#allocation6 + $0x38] sm:$0xff]  ;;  %v57_v6 = vld [vmem:[#allocation6] sm:$0xff]  ;;  %s2569_s28 = smov [#allocation9]  }
  0x39   :  { %v2633_v4 = vpack.c.bf16 %v62_v2, %v58_v1  ;;  %v61_v7 = vld [vmem:[#allocation6 + $0x20] sm:$0xff]  ;;  %v2635_v8 = vpack.c.bf16 %v64_v5, %v60_v3  ;;  %v59_v10 = vld [vmem:[#allocation6 + $0x10] sm:$0xff]  ;;  %v66_v12 = vld [vmem:[#allocation6 + $0x48] sm:$0xff]  ;;  %s1781_s29 = sshll.u32 %s2569_s28, 4  ;;  %s1782_s29 = int_to_ptr.vmem [resolvable:$true] %s1781_s29 }
  0x3a   :  { %v2637_v9 = vpack.c.bf16 %v61_v7, %v57_v6  ;;  %v63_v11 = vld [vmem:[#allocation6 + $0x30] sm:$0xff]  ;;  %v70_v14 = vld [vmem:[#allocation6 + $0x68] sm:$0xff]  ;;  %v68_v15 = vld [vmem:[#allocation6 + $0x58] sm:$0xff]  ;;  %s2530_s30 = scalar_lea.vmem %s1782_s29, 128  ;;  %p2535_p11 = scmp.lt.s32.totalorder %s1782_s29, %s1782_s29 }
  0x3b   :  { %1853 = vmatprep.subr.bf16.mxu0 %v2633_v4  ;;  %v2640_v13 = vpack.c.bf16 %v63_v11, %v59_v10  ;;  %v72_v16 = vld [vmem:[#allocation6 + $0x78] sm:$0xff]  ;;  %1885 = vmatprep.subr.bf16.mxu1 %v2635_v8  ;;  %v2644_v17 = vpack.c.bf16 %v70_v14, %v66_v12  ;;  %v65_v19 = vld [vmem:[#allocation6 + $0x40] sm:$0xff]  ;;  %v67_v21 = vld [vmem:[#allocation6 + $0x50] sm:$0xff]  ;;  %p2531_p10 = scmp.ne.s32.totalorder %s1782_s29, %s2530_s30  ;;  %p2536_p12 = scmp.lt.s32.totalorder %s2530_s30, %s2530_s30 }
  0x3c   :  { %1855 = vmatpush1.bf16.msra.mxu0 %v2637_v9  ;;  %v2646_v18 = vpack.c.bf16 %v72_v16, %v68_v15  ;;  %v69_v20 = vld [vmem:[#allocation6 + $0x60] sm:$0xff]  ;;  %v71_v23 = vld [vmem:[#allocation6 + $0x70] sm:$0xff]  ;;  %v74_v24 = vld [vmem:[#allocation6 + $0x88] sm:$0xff] }
  0x3d   :  { %1887 = vmatpush1.bf16.msra.mxu1 %v2640_v13  ;;  %v2649_v22 = vpack.c.bf16 %v69_v20, %v65_v19  ;;  %v78_v25 = vld [vmem:[#allocation6 + $0xa8] sm:$0xff]  ;;  %1857 = vmatprep.subr.bf16.mxu0 %v2644_v17  ;;  %v2653_v26 = vpack.c.bf16 %v71_v23, %v67_v21  ;;  %v76_v28 = vld [vmem:[#allocation6 + $0x98] sm:$0xff]  ;;  %v73_v30 = vld [vmem:[#allocation6 + $0x80] sm:$0xff]  ;;  %p2537_p13 = por %p2536_p12, %p2535_p11 }
  0x3e   :  { %1889 = vmatprep.subr.bf16.mxu1 %v2646_v18  ;;  %v2655_v27 = vpack.c.bf16 %v78_v25, %v74_v24  ;;  %v80_v29 = vld [vmem:[#allocation6 + $0xb8] sm:$0xff]  ;;  %v77_v32 = vld [vmem:[#allocation6 + $0xa0] sm:$0xff]  ;;  %v75_v33 = vld [vmem:[#allocation6 + $0x90] sm:$0xff] }
  0x3f   :  { %v2657_v31 = vpack.c.bf16 %v80_v29, %v76_v28  ;;  %v79_v34 = vld [vmem:[#allocation6 + $0xb0] sm:$0xff]  ;;  %v2660_v35 = vpack.c.bf16 %v77_v32, %v73_v30  ;;  %v82_v36 = vld [vmem:[#allocation6 + $0xc8] sm:$0xff]  ;;  %v84_v38 = vld [vmem:[#allocation6 + $0xd8] sm:$0xff]  ;;  %p2538_p0 = pnand %p2537_p13, %p2531_p10 }
  0x40   :  { %1859 = vmatpush1.bf16.msra.mxu0 %v2649_v22  ;;  %v86_v37 = vld [vmem:[#allocation6 + $0xe8] sm:$0xff]  ;;  %v2664_v39 = vpack.c.bf16 %v79_v34, %v75_v33  ;;  %v88_v41 = vld [vmem:[#allocation6 + $0xf8] sm:$0xff]  ;;  %v81_v42 = vld [vmem:[#allocation6 + $0xc0] sm:$0xff] }
  0x41   :  { %1891 = vmatpush1.bf16.msra.mxu1 %v2653_v26  ;;  %1861 = vmatprep.subr.bf16.mxu0 %v2655_v27  ;;  %v2666_v40 = vpack.c.bf16 %v86_v37, %v82_v36  ;;  %v85_v43 = vld [vmem:[#allocation6 + $0xe0] sm:$0xff]  ;;  %v2669_v44 = vpack.c.bf16 %v88_v41, %v84_v38  ;;  %v83_v45 = vld [vmem:[#allocation6 + $0xd0] sm:$0xff]  ;;  %v90_v47 = vld [vmem:[#allocation6 + $0x108] sm:$0xff] }
  0x42   :  { %1893 = vmatprep.subr.bf16.mxu1 %v2657_v31  ;;  %v87_v46 = vld [vmem:[#allocation6 + $0xf0] sm:$0xff]  ;;  %v94_v48 = vld [vmem:[#allocation6 + $0x128] sm:$0xff]  ;;  %v92_v49 = vld [vmem:[#allocation6 + $0x118] sm:$0xff]  ;;  %v2672_v51 = vpack.c.bf16 %v85_v43, %v81_v42 }
  0x43   :  { %v96_v50 = vld [vmem:[#allocation6 + $0x138] sm:$0xff]  ;;  %v2676_v52 = vpack.c.bf16 %v87_v46, %v83_v45  ;;  %v2678_v53 = vpack.c.bf16 %v94_v48, %v90_v47  ;;  %v89_v54 = vld [vmem:[#allocation6 + $0x100] sm:$0xff]  ;;  %v91_v56 = vld [vmem:[#allocation6 + $0x110] sm:$0xff]  ;;  %v2566_v48 = vmov 1966171168  }
  0x44   :  { %1863 = vmatpush1.bf16.msra.mxu0 %v2660_v35  ;;  %v93_v55 = vld [vmem:[#allocation6 + $0x120] sm:$0xff]  ;;  %v2681_v57 = vpack.c.bf16 %v96_v50, %v92_v49  ;;  %v95_v58 = vld [vmem:[#allocation6 + $0x130] sm:$0xff]  ;;  %v98_v59 = vld [vmem:[#allocation6 + $0x148] sm:$0xff]  ;;  %v271_v49 = vunpack.c.l.s4 %v2566_v48  ;;  %v273_v50 = vlaneseq }
  0x45   :  { %1895 = vmatpush1.bf16.msra.mxu1 %v2664_v39  ;;  %1865 = vmatprep.subr.bf16.mxu0 %v2666_v40  ;;  %v102_v60 = vld [vmem:[#allocation6 + $0x168] sm:$0xff]  ;;  %v100_v61 = vld [vmem:[#allocation6 + $0x158] sm:$0xff]  ;;  %v2684_v63 = vpack.c.bf16 %v93_v55, %v89_v54  ;;  %v2688_v1 = vpack.c.bf16 %v95_v58, %v91_v56  ;;  %v97_v3 = vld [vmem:[#allocation6 + $0x140] sm:$0xff] }
  0x46   :  { %1897 = vmatprep.subr.bf16.mxu1 %v2669_v44  ;;  %v104_v62 = vld [vmem:[#allocation6 + $0x178] sm:$0xff]  ;;  %v2690_v2 = vpack.c.bf16 %v102_v60, %v98_v59  ;;  %v101_v5 = vld [vmem:[#allocation6 + $0x160] sm:$0xff]  ;;  %v99_v6 = vld [vmem:[#allocation6 + $0x150] sm:$0xff]  ;;  %v272_v54 = vunpack.c.0.s8 %v271_v49  ;;  %v274_v55 = vshrl.u32 %v273_v50, 7 }
  0x47   :  { %v2693_v7 = vpack.c.bf16 %v104_v62, %v100_v61  ;;  %v103_v10 = vld [vmem:[#allocation6 + $0x170] sm:$0xff]  ;;  %v106_v11 = vld [vmem:[#allocation6 + $0x188] sm:$0xff]  ;;  %v108_v14 = vld [vmem:[#allocation6 + $0x198] sm:$0xff]  ;;  %v2696_v16 = vpack.c.bf16 %v101_v5, %v97_v3 }
  0x48   :  { %1867 = vmatpush1.bf16.msra.mxu0 %v2672_v51  ;;  %v110_v12 = vld [vmem:[#allocation6 + $0x1a8] sm:$0xff]  ;;  %v112_v15 = vld [vmem:[#allocation6 + $0x1b8] sm:$0xff]  ;;  %v2700_v19 = vpack.c.bf16 %v103_v10, %v99_v6  ;;  %v105_v21 = vld [vmem:[#allocation6 + $0x180] sm:$0xff]  ;;  %v2767_v58 = vsub.s32 %v272_v54, %v274_v55 }
  0x49   :  { %1899 = vmatpush1.bf16.msra.mxu1 %v2676_v52  ;;  %1869 = vmatprep.subr.bf16.mxu0 %v2678_v53  ;;  %v2702_v20 = vpack.c.bf16 %v110_v12, %v106_v11  ;;  %v109_v23 = vld [vmem:[#allocation6 + $0x1a0] sm:$0xff]  ;;  %v107_v24 = vld [vmem:[#allocation6 + $0x190] sm:$0xff]  ;;  %v2705_v25 = vpack.c.bf16 %v112_v15, %v108_v14  ;;  %v114_v29 = vld [vmem:[#allocation6 + $0x1c8] sm:$0xff] }
  0x4a   :  { %1901 = vmatprep.subr.bf16.mxu1 %v2681_v57  ;;  %v111_v28 = vld [vmem:[#allocation6 + $0x1b0] sm:$0xff]  ;;  %v118_v30 = vld [vmem:[#allocation6 + $0x1e8] sm:$0xff]  ;;  %v116_v32 = vld [vmem:[#allocation6 + $0x1d8] sm:$0xff]  ;;  %v2708_v34 = vpack.c.bf16 %v109_v23, %v105_v21 }
  0x4b   :  { %v120_v33 = vld [vmem:[#allocation6 + $0x1f8] sm:$0xff]  ;;  %v2712_v36 = vpack.c.bf16 %v111_v28, %v107_v24  ;;  %v2714_v37 = vpack.c.bf16 %v118_v30, %v114_v29  ;;  %v113_v38 = vld [vmem:[#allocation6 + $0x1c0] sm:$0xff]  ;;  %v115_v43 = vld [vmem:[#allocation6 + $0x1d0] sm:$0xff] }
  0x4c   :  { %1871 = vmatpush1.bf16.msra.mxu0 %v2684_v63  ;;  %v117_v41 = vld [vmem:[#allocation6 + $0x1e0] sm:$0xff]  ;;  %v2717_v42 = vpack.c.bf16 %v120_v33, %v116_v32  ;;  %v119_v45 = vld [vmem:[#allocation6 + $0x1f0] sm:$0xff] }
  0x4d   :  { %1903 = vmatpush1.bf16.msra.mxu1 %v2688_v1  ;;  %1873 = vmatprep.subr.bf16.mxu0 %v2690_v2  ;;  %v2720_v46 = vpack.c.bf16 %v117_v41, %v113_v38  ;;  %v2724_v47 = vpack.c.bf16 %v119_v45, %v115_v43  ;;  %v121_v11 = vld [vmem:[#allocation3] ss:$8 sm:$0xf] }
  0x4e   :  { %1905 = vmatprep.subr.bf16.mxu1 %v2693_v7 }
  0x50   :  { %1875 = vmatpush1.bf16.msra.mxu0 %v2696_v16 }
  0x51   :  { %1907 = vmatpush1.bf16.msra.mxu1 %v2700_v19  ;;  %1877 = vmatprep.subr.bf16.mxu0 %v2702_v20 }
  0x52   :  { %1909 = vmatprep.subr.bf16.mxu1 %v2705_v25 }
  0x54   :  { %1879 = vmatpush1.bf16.msra.mxu0 %v2708_v34 }
  0x55   :  { %1911 = vmatpush1.bf16.msra.mxu1 %v2712_v36  ;;  %1881 = vmatprep.subr.bf16.mxu0 %v2714_v37 }
  0x56   :  { %1913 = vmatprep.subr.bf16.mxu1 %v2717_v42 }
  0x58   :  { %1883 = vmatpush1.bf16.msra.mxu0 %v2720_v46 }
  0x59   :  { %1915 = vmatpush1.bf16.msra.mxu1 %v2724_v47  ;;  %1917 = vmatprep.subr.bf16.mxu0 %v2633_v4 }
  0x5a   :  { %1949 = vmatprep.subr.bf16.mxu1 %v2635_v8 }
  0x5b   :  { %187 = vmatmul.mubr.f32.vlgmr.msra.gmra.mrb[0].mxu0 %v2565_v0 }
  0x5c   :  { %258 = vmatmul.mubr.f32.vlgmr.msra.gmra.mrb[0].mxu1 %v2565_v0  ;;  %1919 = vmatpush1.bf16.msra.mxu0 %v2637_v9 }
  0x5d   :  { %1951 = vmatpush1.bf16.msra.mxu1 %v2640_v13  ;;  %1921 = vmatprep.subr.bf16.mxu0 %v2644_v17 }
  0x5e   :  { %1953 = vmatprep.subr.bf16.mxu1 %v2646_v18  ;;  %381 = vmatprep.mubr.f32.mxu0 %v2565_v0 }
  0x5f   :  { %452 = vmatprep.mubr.f32.mxu1 %v2565_v0 }
  0x60   :  { %1923 = vmatpush1.bf16.msra.mxu0 %v2649_v22 }
  0x61   :  { %1955 = vmatpush1.bf16.msra.mxu1 %v2653_v26  ;;  %1925 = vmatprep.subr.bf16.mxu0 %v2655_v27 }
  0x62   :  { %1957 = vmatprep.subr.bf16.mxu1 %v2657_v31 }
  0x64   :  { %1927 = vmatpush1.bf16.msra.mxu0 %v2660_v35 }
  0x65   :  { %1959 = vmatpush1.bf16.msra.mxu1 %v2664_v39  ;;  %1929 = vmatprep.subr.bf16.mxu0 %v2666_v40 }
  0x66   :  { %1961 = vmatprep.subr.bf16.mxu1 %v2669_v44 }
  0x68   :  { %1931 = vmatpush1.bf16.msra.mxu0 %v2672_v51 }
  0x69   :  { %1963 = vmatpush1.bf16.msra.mxu1 %v2676_v52  ;;  %1933 = vmatprep.subr.bf16.mxu0 %v2678_v53 }
  0x6a   :  { %1965 = vmatprep.subr.bf16.mxu1 %v2681_v57 }
  0x6c   :  { %1935 = vmatpush1.bf16.msra.mxu0 %v2684_v63 }
  0x6d   :  { %1967 = vmatpush1.bf16.msra.mxu1 %v2688_v1  ;;  %1937 = vmatprep.subr.bf16.mxu0 %v2690_v2 }
  0x6e   :  { %1969 = vmatprep.subr.bf16.mxu1 %v2693_v7 }
  0x70   :  { %1939 = vmatpush1.bf16.msra.mxu0 %v2696_v16 }
  0x71   :  { %1971 = vmatpush1.bf16.msra.mxu1 %v2700_v19  ;;  %1941 = vmatprep.subr.bf16.mxu0 %v2702_v20 }
  0x72   :  { %1973 = vmatprep.subr.bf16.mxu1 %v2705_v25 }
  0x74   :  { %1943 = vmatpush1.bf16.msra.mxu0 %v2708_v34 }
  0x75   :  { %1975 = vmatpush1.bf16.msra.mxu1 %v2712_v36  ;;  %1945 = vmatprep.subr.bf16.mxu0 %v2714_v37 }
  0x76   :  { %1977 = vmatprep.subr.bf16.mxu1 %v2717_v42 }
  0x78   :  { %1947 = vmatpush1.bf16.msra.mxu0 %v2720_v46 }
  0x79   :  { %1979 = vmatpush1.bf16.msra.mxu1 %v2724_v47  ;;  %1981 = vmatprep.subr.bf16.mxu0 %v2633_v4 }
  0x7a   :  { %2013 = vmatprep.subr.bf16.mxu1 %v2635_v8 }
 0x12e   :  { %v188_v56 = vpop.f32.mrb[0].mxu0 }
 0x12f   :  { %v259_v59 = vpop.f32.mrb[0].mxu1  ;;  %v190_v60 = vpop.f32.mrb[1].mxu0 }
 0x130   :  { %v268_v61 = vcombine.low %v188_v56, %v190_v60  ;;  %v261_v62 = vpop.f32.mrb[1].mxu1 }
 0x131   :  { %v269_v3 = vcombine.low %v259_v59, %v261_v62  ;;  %v316_v62 = vld [vmem:[#allocation3 + $0x1] ss:$8 sm:$0xf] }
 0x132   :  { %v276_v5 = vrot.slane %v268_v61, %v2767_v58 }
 0x133   :  { %v283_v6 = vrot.slane %v269_v3, %v2767_v58 }
 0x135   :  { %v284_v10 = vcombine.low %v276_v5, %v283_v6 }
 0x137   :  { %v291_v12 = vrot.slane %v284_v10, %v2767_v58 }
 0x139   :  { %v293_v14 = vadd.f32 %v291_v12, %v121_v11 }
 0x13b   :  { %v1791_v15 = vmul.f32 -1.442695, %v293_v14  ;;  %v301_v24 = vrot.slane %v293_v14, 3 }
 0x13d   :  { %2400 = vpow2.f32 %v1791_v15 }
 0x147   :  { %v2401_v21 = vpop.eup %2400 }
 0x148   :  { %v297_v23 = vadd.f32 1.0, %v2401_v21 }
 0x14a   :  { %2402 = vrcp.f32 %v297_v23 }
 0x14b   :  { %2404 = vtanh.f32 %v301_v24 }
 0x154   :  { %v2403_v28 = vpop.eup %2402 }
 0x155   :  { %v305_v29 = vrot.slane %v2403_v28, 1  ;;  %v2405_v30 = vpop.eup %2404  ;;  %v311_v41 = vrot.slane %v2403_v28, 2 }
 0x156   :  { %v308_v32 = vmul.f32 %v2405_v30, %v2403_v28 }
 0x157   :  { %v307_v33 = vmul.f32 0.0, %v305_v29 }
 0x159   :  { %v2772_v38 = vadd.f32 %v308_v32, %v307_v33 }
 0x15b   :  { %2406 = vtanh.f32 %v2772_v38 }
 0x165   :  { %v2407_v43 = vpop.eup %2406 }
 0x166   :  { %v313_v45 = vmul.f32 %v2407_v43, %v311_v41 }
 0x168   :  { %314 = vst [vmem:[#allocation2] sm:$0x1] %v313_v45  ;;  %382 = vmatmul.mubr.f32.vlgmr.msra.gmra.mrb[2].mxu0 %v313_v45  ;;  %453 = vmatmul.mubr.f32.vlgmr.msra.gmra.mrb[2].mxu1 %v313_v45 }
 0x169   :  { %1983 = vmatpush1.bf16.msra.mxu0 %v2637_v9  ;;  %2015 = vmatpush1.bf16.msra.mxu1 %v2640_v13 }
 0x16a   :  { %1985 = vmatprep.subr.bf16.mxu0 %v2644_v17  ;;  %2017 = vmatprep.subr.bf16.mxu1 %v2646_v18 }
 0x16b   :  { %576 = vmatprep.mubr.f32.mxu0 %v2565_v0  ;;  %647 = vmatprep.mubr.f32.mxu1 %v2565_v0 }
 0x16d   :  { %1987 = vmatpush1.bf16.msra.mxu0 %v2649_v22  ;;  %2019 = vmatpush1.bf16.msra.mxu1 %v2653_v26 }
 0x16e   :  { %1989 = vmatprep.subr.bf16.mxu0 %v2655_v27  ;;  %2021 = vmatprep.subr.bf16.mxu1 %v2657_v31 }
 0x171   :  { %1991 = vmatpush1.bf16.msra.mxu0 %v2660_v35  ;;  %2023 = vmatpush1.bf16.msra.mxu1 %v2664_v39 }
 0x172   :  { %1993 = vmatprep.subr.bf16.mxu0 %v2666_v40  ;;  %2025 = vmatprep.subr.bf16.mxu1 %v2669_v44 }
 0x175   :  { %1995 = vmatpush1.bf16.msra.mxu0 %v2672_v51  ;;  %2027 = vmatpush1.bf16.msra.mxu1 %v2676_v52 }
 0x176   :  { %1997 = vmatprep.subr.bf16.mxu0 %v2678_v53  ;;  %2029 = vmatprep.subr.bf16.mxu1 %v2681_v57 }
 0x179   :  { %1999 = vmatpush1.bf16.msra.mxu0 %v2684_v63  ;;  %2031 = vmatpush1.bf16.msra.mxu1 %v2688_v1 }
 0x17a   :  { %2001 = vmatprep.subr.bf16.mxu0 %v2690_v2  ;;  %2033 = vmatprep.subr.bf16.mxu1 %v2693_v7 }
 0x17d   :  { %2003 = vmatpush1.bf16.msra.mxu0 %v2696_v16  ;;  %2035 = vmatpush1.bf16.msra.mxu1 %v2700_v19 }
 0x17e   :  { %2005 = vmatprep.subr.bf16.mxu0 %v2702_v20  ;;  %2037 = vmatprep.subr.bf16.mxu1 %v2705_v25 }
 0x181   :  { %2007 = vmatpush1.bf16.msra.mxu0 %v2708_v34  ;;  %2039 = vmatpush1.bf16.msra.mxu1 %v2712_v36 }
 0x182   :  { %2009 = vmatprep.subr.bf16.mxu0 %v2714_v37  ;;  %2041 = vmatprep.subr.bf16.mxu1 %v2717_v42 }
 0x185   :  { %2011 = vmatpush1.bf16.msra.mxu0 %v2720_v46  ;;  %2043 = vmatpush1.bf16.msra.mxu1 %v2724_v47 }
 0x186   :  { %2045 = vmatprep.subr.bf16.mxu0 %v2633_v4  ;;  %2077 = vmatprep.subr.bf16.mxu1 %v2635_v8 }
 0x23b   :  { %v383_v48 = vpop.f32.mrb[2].mxu0  ;;  %v454_v49 = vpop.f32.mrb[2].mxu1 }
 0x23c   :  { %v385_v50 = vpop.f32.mrb[3].mxu0  ;;  %v456_v54 = vpop.f32.mrb[3].mxu1 }
 0x23d   :  { %v463_v55 = vcombine.low %v383_v48, %v385_v50  ;;  %v464_v56 = vcombine.low %v454_v49, %v456_v54 }
 0x23f   :  { %v471_v59 = vrot.slane %v463_v55, %v2767_v58  ;;  %v478_v60 = vrot.slane %v464_v56, %v2767_v58  ;;  %v511_v55 = vld [vmem:[#allocation3 + $0x2] ss:$8 sm:$0xf] }
 0x241   :  { %v479_v61 = vcombine.low %v471_v59, %v478_v60 }
 0x243   :  { %v486_v3 = vrot.slane %v479_v61, %v2767_v58 }
 0x245   :  { %v488_v5 = vadd.f32 %v486_v3, %v316_v62 }
 0x247   :  { %v1792_v6 = vmul.f32 -1.442695, %v488_v5  ;;  %v496_v12 = vrot.slane %v488_v5, 3 }
 0x249   :  { %2408 = vpow2.f32 %v1792_v6 }
 0x253   :  { %v2409_v10 = vpop.eup %2408 }
 0x254   :  { %v492_v11 = vadd.f32 1.0, %v2409_v10 }
 0x256   :  { %2410 = vrcp.f32 %v492_v11 }
 0x257   :  { %2412 = vtanh.f32 %v496_v12 }
 0x260   :  { %v2411_v14 = vpop.eup %2410 }
 0x261   :  { %v500_v15 = vrot.slane %v2411_v14, 1  ;;  %v2413_v21 = vpop.eup %2412  ;;  %v506_v29 = vrot.slane %v2411_v14, 2 }
 0x262   :  { %v503_v23 = vmul.f32 %v2413_v21, %v2411_v14 }
 0x263   :  { %v502_v24 = vmul.f32 %v500_v15, %v2772_v38 }
 0x265   :  { %v2813_v28 = vadd.f32 %v503_v23, %v502_v24 }
 0x267   :  { %2414 = vtanh.f32 %v2813_v28 }
 0x271   :  { %v2415_v30 = vpop.eup %2414 }
 0x272   :  { %v508_v32 = vmul.f32 %v2415_v30, %v506_v29 }
 0x274   :  { %509 = vst [vmem:[#allocation2 + $0x1] sm:$0x1] %v508_v32  ;;  %577 = vmatmul.mubr.f32.vlgmr.msra.gmra.mrb[4].mxu0 %v508_v32  ;;  %648 = vmatmul.mubr.f32.vlgmr.msra.gmra.mrb[4].mxu1 %v508_v32 }
 0x275   :  { %2047 = vmatpush1.bf16.msra.mxu0 %v2637_v9  ;;  %2079 = vmatpush1.bf16.msra.mxu1 %v2640_v13 }
 0x276   :  { %2049 = vmatprep.subr.bf16.mxu0 %v2644_v17  ;;  %2081 = vmatprep.subr.bf16.mxu1 %v2646_v18 }
 0x277   :  { %771 = vmatprep.mubr.f32.mxu0 %v2565_v0  ;;  %842 = vmatprep.mubr.f32.mxu1 %v2565_v0 }
 0x279   :  { %2051 = vmatpush1.bf16.msra.mxu0 %v2649_v22  ;;  %2083 = vmatpush1.bf16.msra.mxu1 %v2653_v26 }
 0x27a   :  { %2053 = vmatprep.subr.bf16.mxu0 %v2655_v27  ;;  %2085 = vmatprep.subr.bf16.mxu1 %v2657_v31 }
 0x27d   :  { %2055 = vmatpush1.bf16.msra.mxu0 %v2660_v35  ;;  %2087 = vmatpush1.bf16.msra.mxu1 %v2664_v39 }
 0x27e   :  { %2057 = vmatprep.subr.bf16.mxu0 %v2666_v40  ;;  %2089 = vmatprep.subr.bf16.mxu1 %v2669_v44 }
 0x281   :  { %2059 = vmatpush1.bf16.msra.mxu0 %v2672_v51  ;;  %2091 = vmatpush1.bf16.msra.mxu1 %v2676_v52 }
 0x282   :  { %2061 = vmatprep.subr.bf16.mxu0 %v2678_v53  ;;  %2093 = vmatprep.subr.bf16.mxu1 %v2681_v57 }
 0x285   :  { %2063 = vmatpush1.bf16.msra.mxu0 %v2684_v63  ;;  %2095 = vmatpush1.bf16.msra.mxu1 %v2688_v1 }
 0x286   :  { %2065 = vmatprep.subr.bf16.mxu0 %v2690_v2  ;;  %2097 = vmatprep.subr.bf16.mxu1 %v2693_v7 }
 0x289   :  { %2067 = vmatpush1.bf16.msra.mxu0 %v2696_v16  ;;  %2099 = vmatpush1.bf16.msra.mxu1 %v2700_v19 }
 0x28a   :  { %2069 = vmatprep.subr.bf16.mxu0 %v2702_v20  ;;  %2101 = vmatprep.subr.bf16.mxu1 %v2705_v25 }
 0x28d   :  { %2071 = vmatpush1.bf16.msra.mxu0 %v2708_v34  ;;  %2103 = vmatpush1.bf16.msra.mxu1 %v2712_v36 }
 0x28e   :  { %2073 = vmatprep.subr.bf16.mxu0 %v2714_v37  ;;  %2105 = vmatprep.subr.bf16.mxu1 %v2717_v42 }
 0x291   :  { %2075 = vmatpush1.bf16.msra.mxu0 %v2720_v46  ;;  %2107 = vmatpush1.bf16.msra.mxu1 %v2724_v47 }
 0x292   :  { %2109 = vmatprep.subr.bf16.mxu0 %v2633_v4  ;;  %2141 = vmatprep.subr.bf16.mxu1 %v2635_v8 }
 0x347   :  { %v578_v33 = vpop.f32.mrb[4].mxu0  ;;  %v649_v38 = vpop.f32.mrb[4].mxu1 }
 0x348   :  { %v580_v41 = vpop.f32.mrb[5].mxu0  ;;  %v651_v43 = vpop.f32.mrb[5].mxu1 }
 0x349   :  { %v658_v45 = vcombine.low %v578_v33, %v580_v41  ;;  %v659_v48 = vcombine.low %v649_v38, %v651_v43 }
 0x34b   :  { %v666_v49 = vrot.slane %v658_v45, %v2767_v58  ;;  %v673_v50 = vrot.slane %v659_v48, %v2767_v58  ;;  %v706_v45 = vld [vmem:[#allocation3 + $0x3] ss:$8 sm:$0xf] }
 0x34d   :  { %v674_v54 = vcombine.low %v666_v49, %v673_v50 }
 0x34f   :  { %v681_v56 = vrot.slane %v674_v54, %v2767_v58 }
 0x351   :  { %v683_v59 = vadd.f32 %v681_v56, %v511_v55 }
 0x353   :  { %v1793_v60 = vmul.f32 -1.442695, %v683_v59  ;;  %v691_v3 = vrot.slane %v683_v59, 3 }
 0x355   :  { %2416 = vpow2.f32 %v1793_v60 }
 0x35f   :  { %v2417_v61 = vpop.eup %2416 }
 0x360   :  { %v687_v62 = vadd.f32 1.0, %v2417_v61 }
 0x362   :  { %2418 = vrcp.f32 %v687_v62 }
 0x363   :  { %2420 = vtanh.f32 %v691_v3 }
 0x36c   :  { %v2419_v5 = vpop.eup %2418 }
 0x36d   :  { %v695_v6 = vrot.slane %v2419_v5, 1  ;;  %v2421_v10 = vpop.eup %2420  ;;  %v701_v15 = vrot.slane %v2419_v5, 2 }
 0x36e   :  { %v698_v11 = vmul.f32 %v2421_v10, %v2419_v5 }
 0x36f   :  { %v697_v12 = vmul.f32 %v695_v6, %v2813_v28 }
 0x371   :  { %v2854_v14 = vadd.f32 %v698_v11, %v697_v12 }
 0x373   :  { %2422 = vtanh.f32 %v2854_v14 }
 0x37d   :  { %v2423_v21 = vpop.eup %2422 }
 0x37e   :  { %v703_v23 = vmul.f32 %v2423_v21, %v701_v15 }
 0x380   :  { %704 = vst [vmem:[#allocation2 + $0x2] sm:$0x1] %v703_v23  ;;  %772 = vmatmul.mubr.f32.vlgmr.msra.gmra.mrb[6].mxu0 %v703_v23  ;;  %843 = vmatmul.mubr.f32.vlgmr.msra.gmra.mrb[6].mxu1 %v703_v23 }
 0x381   :  { %2111 = vmatpush1.bf16.msra.mxu0 %v2637_v9  ;;  %2143 = vmatpush1.bf16.msra.mxu1 %v2640_v13 }
 0x382   :  { %2113 = vmatprep.subr.bf16.mxu0 %v2644_v17  ;;  %2145 = vmatprep.subr.bf16.mxu1 %v2646_v18 }
 0x383   :  { %966 = vmatprep.mubr.f32.mxu0 %v2565_v0  ;;  %1037 = vmatprep.mubr.f32.mxu1 %v2565_v0 }
 0x385   :  { %2115 = vmatpush1.bf16.msra.mxu0 %v2649_v22  ;;  %2147 = vmatpush1.bf16.msra.mxu1 %v2653_v26 }
 0x386   :  { %2117 = vmatprep.subr.bf16.mxu0 %v2655_v27  ;;  %2149 = vmatprep.subr.bf16.mxu1 %v2657_v31 }
 0x389   :  { %2119 = vmatpush1.bf16.msra.mxu0 %v2660_v35  ;;  %2151 = vmatpush1.bf16.msra.mxu1 %v2664_v39 }
 0x38a   :  { %2121 = vmatprep.subr.bf16.mxu0 %v2666_v40  ;;  %2153 = vmatprep.subr.bf16.mxu1 %v2669_v44 }
 0x38d   :  { %2123 = vmatpush1.bf16.msra.mxu0 %v2672_v51  ;;  %2155 = vmatpush1.bf16.msra.mxu1 %v2676_v52 }
 0x38e   :  { %2125 = vmatprep.subr.bf16.mxu0 %v2678_v53  ;;  %2157 = vmatprep.subr.bf16.mxu1 %v2681_v57 }
 0x391   :  { %2127 = vmatpush1.bf16.msra.mxu0 %v2684_v63  ;;  %2159 = vmatpush1.bf16.msra.mxu1 %v2688_v1 }
 0x392   :  { %2129 = vmatprep.subr.bf16.mxu0 %v2690_v2  ;;  %2161 = vmatprep.subr.bf16.mxu1 %v2693_v7 }
 0x395   :  { %2131 = vmatpush1.bf16.msra.mxu0 %v2696_v16  ;;  %2163 = vmatpush1.bf16.msra.mxu1 %v2700_v19 }
 0x396   :  { %2133 = vmatprep.subr.bf16.mxu0 %v2702_v20  ;;  %2165 = vmatprep.subr.bf16.mxu1 %v2705_v25 }
 0x399   :  { %2135 = vmatpush1.bf16.msra.mxu0 %v2708_v34  ;;  %2167 = vmatpush1.bf16.msra.mxu1 %v2712_v36 }
 0x39a   :  { %2137 = vmatprep.subr.bf16.mxu0 %v2714_v37  ;;  %2169 = vmatprep.subr.bf16.mxu1 %v2717_v42 }
 0x39d   :  { %2139 = vmatpush1.bf16.msra.mxu0 %v2720_v46  ;;  %2171 = vmatpush1.bf16.msra.mxu1 %v2724_v47 }
 0x39e   :  { %2173 = vmatprep.subr.bf16.mxu0 %v2633_v4  ;;  %2205 = vmatprep.subr.bf16.mxu1 %v2635_v8 }
 0x453   :  { %v773_v24 = vpop.f32.mrb[6].mxu0  ;;  %v844_v28 = vpop.f32.mrb[6].mxu1 }
 0x454   :  { %v775_v29 = vpop.f32.mrb[7].mxu0  ;;  %v846_v30 = vpop.f32.mrb[7].mxu1 }
 0x455   :  { %v853_v32 = vcombine.low %v773_v24, %v775_v29  ;;  %v854_v33 = vcombine.low %v844_v28, %v846_v30 }
 0x457   :  { %v861_v38 = vrot.slane %v853_v32, %v2767_v58  ;;  %v868_v41 = vrot.slane %v854_v33, %v2767_v58  ;;  %v901_v32 = vld [vmem:[#allocation3 + $0x4] ss:$8 sm:$0xf] }
 0x459   :  { %v869_v43 = vcombine.low %v861_v38, %v868_v41 }
 0x45b   :  { %v876_v48 = vrot.slane %v869_v43, %v2767_v58 }
 0x45d   :  { %v878_v49 = vadd.f32 %v876_v48, %v706_v45 }
 0x45f   :  { %v1794_v50 = vmul.f32 -1.442695, %v878_v49  ;;  %v886_v56 = vrot.slane %v878_v49, 3 }
 0x461   :  { %2424 = vpow2.f32 %v1794_v50 }
 0x46b   :  { %v2425_v54 = vpop.eup %2424 }
 0x46c   :  { %v882_v55 = vadd.f32 1.0, %v2425_v54 }
 0x46e   :  { %2426 = vrcp.f32 %v882_v55 }
 0x46f   :  { %2428 = vtanh.f32 %v886_v56 }
 0x478   :  { %v2427_v59 = vpop.eup %2426 }
 0x479   :  { %v890_v60 = vrot.slane %v2427_v59, 1  ;;  %v2429_v61 = vpop.eup %2428  ;;  %v896_v6 = vrot.slane %v2427_v59, 2 }
 0x47a   :  { %v893_v62 = vmul.f32 %v2429_v61, %v2427_v59 }
 0x47b   :  { %v892_v3 = vmul.f32 %v890_v60, %v2854_v14 }
 0x47d   :  { %v2895_v5 = vadd.f32 %v893_v62, %v892_v3 }
 0x47f   :  { %2430 = vtanh.f32 %v2895_v5 }
 0x489   :  { %v2431_v10 = vpop.eup %2430 }
 0x48a   :  { %v898_v11 = vmul.f32 %v2431_v10, %v896_v6 }
 0x48c   :  { %899 = vst [vmem:[#allocation2 + $0x3] sm:$0x1] %v898_v11  ;;  %967 = vmatmul.mubr.f32.vlgmr.msra.gmra.mrb[8].mxu0 %v898_v11  ;;  %1038 = vmatmul.mubr.f32.vlgmr.msra.gmra.mrb[8].mxu1 %v898_v11 }
 0x48d   :  { %2175 = vmatpush1.bf16.msra.mxu0 %v2637_v9  ;;  %2207 = vmatpush1.bf16.msra.mxu1 %v2640_v13 }
 0x48e   :  { %2177 = vmatprep.subr.bf16.mxu0 %v2644_v17  ;;  %2209 = vmatprep.subr.bf16.mxu1 %v2646_v18 }
 0x48f   :  { %1161 = vmatprep.mubr.f32.mxu0 %v2565_v0  ;;  %1232 = vmatprep.mubr.f32.mxu1 %v2565_v0 }
 0x491   :  { %2179 = vmatpush1.bf16.msra.mxu0 %v2649_v22  ;;  %2211 = vmatpush1.bf16.msra.mxu1 %v2653_v26 }
 0x492   :  { %2181 = vmatprep.subr.bf16.mxu0 %v2655_v27  ;;  %2213 = vmatprep.subr.bf16.mxu1 %v2657_v31 }
 0x495   :  { %2183 = vmatpush1.bf16.msra.mxu0 %v2660_v35  ;;  %2215 = vmatpush1.bf16.msra.mxu1 %v2664_v39 }
 0x496   :  { %2185 = vmatprep.subr.bf16.mxu0 %v2666_v40  ;;  %2217 = vmatprep.subr.bf16.mxu1 %v2669_v44 }
 0x499   :  { %2187 = vmatpush1.bf16.msra.mxu0 %v2672_v51  ;;  %2219 = vmatpush1.bf16.msra.mxu1 %v2676_v52 }
 0x49a   :  { %2189 = vmatprep.subr.bf16.mxu0 %v2678_v53  ;;  %2221 = vmatprep.subr.bf16.mxu1 %v2681_v57 }
 0x49d   :  { %2191 = vmatpush1.bf16.msra.mxu0 %v2684_v63  ;;  %2223 = vmatpush1.bf16.msra.mxu1 %v2688_v1 }
 0x49e   :  { %2193 = vmatprep.subr.bf16.mxu0 %v2690_v2  ;;  %2225 = vmatprep.subr.bf16.mxu1 %v2693_v7 }
 0x4a1   :  { %2195 = vmatpush1.bf16.msra.mxu0 %v2696_v16  ;;  %2227 = vmatpush1.bf16.msra.mxu1 %v2700_v19 }
 0x4a2   :  { %2197 = vmatprep.subr.bf16.mxu0 %v2702_v20  ;;  %2229 = vmatprep.subr.bf16.mxu1 %v2705_v25 }
 0x4a5   :  { %2199 = vmatpush1.bf16.msra.mxu0 %v2708_v34  ;;  %2231 = vmatpush1.bf16.msra.mxu1 %v2712_v36 }
 0x4a6   :  { %2201 = vmatprep.subr.bf16.mxu0 %v2714_v37  ;;  %2233 = vmatprep.subr.bf16.mxu1 %v2717_v42 }
 0x4a9   :  { %2203 = vmatpush1.bf16.msra.mxu0 %v2720_v46  ;;  %2235 = vmatpush1.bf16.msra.mxu1 %v2724_v47 }
 0x4aa   :  { %2237 = vmatprep.subr.bf16.mxu0 %v2633_v4  ;;  %2269 = vmatprep.subr.bf16.mxu1 %v2635_v8 }
 0x55f   :  { %v968_v12 = vpop.f32.mrb[8].mxu0  ;;  %v1039_v14 = vpop.f32.mrb[8].mxu1 }
 0x560   :  { %v970_v15 = vpop.f32.mrb[9].mxu0  ;;  %v1041_v21 = vpop.f32.mrb[9].mxu1 }
 0x561   :  { %v1048_v23 = vcombine.low %v968_v12, %v970_v15  ;;  %v1049_v24 = vcombine.low %v1039_v14, %v1041_v21 }
 0x563   :  { %v1056_v28 = vrot.slane %v1048_v23, %v2767_v58  ;;  %v1063_v29 = vrot.slane %v1049_v24, %v2767_v58  ;;  %v1096_v23 = vld [vmem:[#allocation3 + $0x5] ss:$8 sm:$0xf] }
 0x565   :  { %v1064_v30 = vcombine.low %v1056_v28, %v1063_v29 }
 0x567   :  { %v1071_v33 = vrot.slane %v1064_v30, %v2767_v58 }
 0x569   :  { %v1073_v38 = vadd.f32 %v1071_v33, %v901_v32 }
 0x56b   :  { %v1795_v41 = vmul.f32 -1.442695, %v1073_v38  ;;  %v1081_v48 = vrot.slane %v1073_v38, 3 }
 0x56d   :  { %2432 = vpow2.f32 %v1795_v41 }
 0x577   :  { %v2433_v43 = vpop.eup %2432 }
 0x578   :  { %v1077_v45 = vadd.f32 1.0, %v2433_v43 }
 0x57a   :  { %2434 = vrcp.f32 %v1077_v45 }
 0x57b   :  { %2436 = vtanh.f32 %v1081_v48 }
 0x584   :  { %v2435_v49 = vpop.eup %2434 }
 0x585   :  { %v1085_v50 = vrot.slane %v2435_v49, 1  ;;  %v2437_v54 = vpop.eup %2436  ;;  %v1091_v60 = vrot.slane %v2435_v49, 2 }
 0x586   :  { %v1088_v55 = vmul.f32 %v2437_v54, %v2435_v49  ;;  %v1684_v54 = vld [vmem:[#allocation8 + $0x18] sm:$0xff] }
 0x587   :  { %v1087_v56 = vmul.f32 %v1085_v50, %v2895_v5 }
 0x589   :  { %v2936_v59 = vadd.f32 %v1088_v55, %v1087_v56  ;;  %v1685_v56 = vld [vmem:[#allocation8 + $0x20] sm:$0xff] }
 0x58b   :  { %2438 = vtanh.f32 %v2936_v59 }
 0x595   :  { %v2439_v61 = vpop.eup %2438 }
 0x596   :  { %v1093_v62 = vmul.f32 %v2439_v61, %v1091_v60  ;;  %v1687_v61 = vld [vmem:[#allocation8 + $0x30] sm:$0xff] }
 0x598   :  { %1094 = vst [vmem:[#allocation2 + $0x4] sm:$0x1] %v1093_v62  ;;  %1162 = vmatmul.mubr.f32.vlgmr.msra.gmra.mrb[10].mxu0 %v1093_v62  ;;  %1233 = vmatmul.mubr.f32.vlgmr.msra.gmra.mrb[10].mxu1 %v1093_v62  ;;  %v1688_v62 = vld [vmem:[#allocation8 + $0x38] sm:$0xff] }
 0x599   :  { %2239 = vmatpush1.bf16.msra.mxu0 %v2637_v9  ;;  %2271 = vmatpush1.bf16.msra.mxu1 %v2640_v13 }
 0x59a   :  { %2241 = vmatprep.subr.bf16.mxu0 %v2644_v17  ;;  %2273 = vmatprep.subr.bf16.mxu1 %v2646_v18 }
 0x59b   :  { %1356 = vmatprep.mubr.f32.mxu0 %v2565_v0  ;;  %1427 = vmatprep.mubr.f32.mxu1 %v2565_v0 }
 0x59d   :  { %2243 = vmatpush1.bf16.msra.mxu0 %v2649_v22  ;;  %2275 = vmatpush1.bf16.msra.mxu1 %v2653_v26 }
 0x59e   :  { %2245 = vmatprep.subr.bf16.mxu0 %v2655_v27  ;;  %2277 = vmatprep.subr.bf16.mxu1 %v2657_v31 }
 0x5a1   :  { %2247 = vmatpush1.bf16.msra.mxu0 %v2660_v35  ;;  %2279 = vmatpush1.bf16.msra.mxu1 %v2664_v39 }
 0x5a2   :  { %2249 = vmatprep.subr.bf16.mxu0 %v2666_v40  ;;  %2281 = vmatprep.subr.bf16.mxu1 %v2669_v44 }
 0x5a5   :  { %2251 = vmatpush1.bf16.msra.mxu0 %v2672_v51  ;;  %2283 = vmatpush1.bf16.msra.mxu1 %v2676_v52 }
 0x5a6   :  { %2253 = vmatprep.subr.bf16.mxu0 %v2678_v53  ;;  %2285 = vmatprep.subr.bf16.mxu1 %v2681_v57 }
 0x5a9   :  { %2255 = vmatpush1.bf16.msra.mxu0 %v2684_v63  ;;  %2287 = vmatpush1.bf16.msra.mxu1 %v2688_v1 }
 0x5aa   :  { %2257 = vmatprep.subr.bf16.mxu0 %v2690_v2  ;;  %2289 = vmatprep.subr.bf16.mxu1 %v2693_v7 }
 0x5ad   :  { %2259 = vmatpush1.bf16.msra.mxu0 %v2696_v16  ;;  %2291 = vmatpush1.bf16.msra.mxu1 %v2700_v19 }
 0x5ae   :  { %2261 = vmatprep.subr.bf16.mxu0 %v2702_v20  ;;  %2293 = vmatprep.subr.bf16.mxu1 %v2705_v25 }
 0x5b1   :  { %2263 = vmatpush1.bf16.msra.mxu0 %v2708_v34  ;;  %2295 = vmatpush1.bf16.msra.mxu1 %v2712_v36 }
 0x5b2   :  { %2265 = vmatprep.subr.bf16.mxu0 %v2714_v37  ;;  %2297 = vmatprep.subr.bf16.mxu1 %v2717_v42 }
 0x5b5   :  { %2267 = vmatpush1.bf16.msra.mxu0 %v2720_v46  ;;  %2299 = vmatpush1.bf16.msra.mxu1 %v2724_v47 }
 0x5b6   :  { %2301 = vmatprep.subr.bf16.mxu0 %v2633_v4  ;;  %2333 = vmatprep.subr.bf16.mxu1 %v2635_v8 }
 0x66b   :  { %v1163_v3 = vpop.f32.mrb[10].mxu0  ;;  %v1234_v5 = vpop.f32.mrb[10].mxu1 }
 0x66c   :  { %v1165_v6 = vpop.f32.mrb[11].mxu0  ;;  %v1236_v10 = vpop.f32.mrb[11].mxu1 }
 0x66d   :  { %v1243_v11 = vcombine.low %v1163_v3, %v1165_v6  ;;  %v1244_v12 = vcombine.low %v1234_v5, %v1236_v10  ;;  %v2374_v3 = vpack.c.bf16 %v1688_v62, %v1687_v61  ;;  %v1689_v5 = vld [vmem:[#allocation8 + $0x40] sm:$0xff]  ;;  %v1690_v6 = vld [vmem:[#allocation8 + $0x48] sm:$0xff] }
 0x66e   :  { %v2377_v10 = vpack.c.bf16 %v1690_v6, %v1689_v5 }
 0x66f   :  { %v1251_v14 = vrot.slane %v1243_v11, %v2767_v58  ;;  %v1258_v15 = vrot.slane %v1244_v12, %v2767_v58  ;;  %v1691_v11 = vld [vmem:[#allocation8 + $0x50] sm:$0xff]  ;;  %v1692_v12 = vld [vmem:[#allocation8 + $0x58] sm:$0xff] }
 0x671   :  { %v1259_v21 = vcombine.low %v1251_v14, %v1258_v15  ;;  %v2380_v14 = vpack.c.bf16 %v1692_v12, %v1691_v11  ;;  %v1693_v15 = vld [vmem:[#allocation8 + $0x60] sm:$0xff] }
 0x673   :  { %v1266_v24 = vrot.slane %v1259_v21, %v2767_v58  ;;  %v1694_v21 = vld [vmem:[#allocation8 + $0x68] sm:$0xff] }
 0x675   :  { %v1268_v28 = vadd.f32 %v1266_v24, %v1096_v23  ;;  %v2383_v23 = vpack.c.bf16 %v1694_v21, %v1693_v15  ;;  %v1695_v24 = vld [vmem:[#allocation8 + $0x70] sm:$0xff] }
 0x677   :  { %v1796_v29 = vmul.f32 -1.442695, %v1268_v28  ;;  %v1276_v8 = vrot.slane %v1268_v28, 3  ;;  %v1696_v28 = vld [vmem:[#allocation8 + $0x78] sm:$0xff] }
 0x679   :  { %2440 = vpow2.f32 %v1796_v29  ;;  %v2386_v29 = vpack.c.bf16 %v1696_v28, %v1695_v24 }
 0x683   :  { %v2441_v4 = vpop.eup %2440 }
 0x684   :  { %v1272_v30 = vadd.f32 1.0, %v2441_v4 }
 0x686   :  { %2442 = vrcp.f32 %v1272_v30 }
 0x687   :  { %2444 = vtanh.f32 %v1276_v8 }
 0x690   :  { %v2443_v32 = vpop.eup %2442 }
 0x691   :  { %v1280_v33 = vrot.slane %v2443_v32, 1  ;;  %v2445_v38 = vpop.eup %2444  ;;  %v1286_v48 = vrot.slane %v2443_v32, 2 }
 0x692   :  { %v1283_v41 = vmul.f32 %v2445_v38, %v2443_v32 }
 0x693   :  { %v1282_v43 = vmul.f32 %v1280_v33, %v2936_v59  ;;  %v1686_v59 = vld [vmem:[#allocation8 + $0x28] sm:$0xff] }
 0x694   :  { %v2371_v60 = vpack.c.bf16 %v1686_v59, %v1685_v56 }
 0x695   :  { %v2977_v45 = vadd.f32 %v1283_v41, %v1282_v43 }
 0x697   :  { %2446 = vtanh.f32 %v2977_v45 }
 0x6a1   :  { %v2447_v49 = vpop.eup %2446 }
 0x6a2   :  { %v1288_v50 = vmul.f32 %v2447_v49, %v1286_v48  ;;  %v1486_v48 = vld [vmem:[#allocation3 + $0x7] ss:$8 sm:$0xf] }
 0x6a4   :  { %1289 = vst [vmem:[#allocation2 + $0x5] sm:$0x1] %v1288_v50  ;;  %1357 = vmatmul.mubr.f32.vlgmr.msra.gmra.mrb[12].mxu0 %v1288_v50  ;;  %1428 = vmatmul.mubr.f32.vlgmr.msra.gmra.mrb[12].mxu1 %v1288_v50 }
 0x6a5   :  { %2303 = vmatpush1.bf16.msra.mxu0 %v2637_v9  ;;  %2335 = vmatpush1.bf16.msra.mxu1 %v2640_v13 }
 0x6a6   :  { %2305 = vmatprep.subr.bf16.mxu0 %v2644_v17  ;;  %2337 = vmatprep.subr.bf16.mxu1 %v2646_v18 }
 0x6a7   :  { %1551 = vmatprep.mubr.f32.mxu0 %v2565_v0  ;;  %1622 = vmatprep.mubr.f32.mxu1 %v2565_v0 }
 0x6a9   :  { %2307 = vmatpush1.bf16.msra.mxu0 %v2649_v22  ;;  %2339 = vmatpush1.bf16.msra.mxu1 %v2653_v26 }
 0x6aa   :  { %2309 = vmatprep.subr.bf16.mxu0 %v2655_v27  ;;  %2341 = vmatprep.subr.bf16.mxu1 %v2657_v31 }
 0x6ad   :  { %2311 = vmatpush1.bf16.msra.mxu0 %v2660_v35  ;;  %2343 = vmatpush1.bf16.msra.mxu1 %v2664_v39  ;;  %v1291_v39 = vld [vmem:[#allocation3 + $0x6] ss:$8 sm:$0xf] }
 0x6ae   :  { %2313 = vmatprep.subr.bf16.mxu0 %v2666_v40  ;;  %2345 = vmatprep.subr.bf16.mxu1 %v2669_v44 }
 0x6b1   :  { %2315 = vmatpush1.bf16.msra.mxu0 %v2672_v51  ;;  %2347 = vmatpush1.bf16.msra.mxu1 %v2676_v52 }
 0x6b2   :  { %2317 = vmatprep.subr.bf16.mxu0 %v2678_v53  ;;  %2349 = vmatprep.subr.bf16.mxu1 %v2681_v57 }
 0x6b5   :  { %2319 = vmatpush1.bf16.msra.mxu0 %v2684_v63  ;;  %2351 = vmatpush1.bf16.msra.mxu1 %v2688_v1 }
 0x6b6   :  { %2321 = vmatprep.subr.bf16.mxu0 %v2690_v2  ;;  %2353 = vmatprep.subr.bf16.mxu1 %v2693_v7 }
 0x6b9   :  { %2323 = vmatpush1.bf16.msra.mxu0 %v2696_v16  ;;  %2355 = vmatpush1.bf16.msra.mxu1 %v2700_v19 }
 0x6ba   :  { %2325 = vmatprep.subr.bf16.mxu0 %v2702_v20  ;;  %2357 = vmatprep.subr.bf16.mxu1 %v2705_v25 }
 0x6bd   :  { %2327 = vmatpush1.bf16.msra.mxu0 %v2708_v34  ;;  %2359 = vmatpush1.bf16.msra.mxu1 %v2712_v36  ;;  %v1681_v36 = vld [vmem:[#allocation8] sm:$0xff] }
 0x6be   :  { %2329 = vmatprep.subr.bf16.mxu0 %v2714_v37  ;;  %2361 = vmatprep.subr.bf16.mxu1 %v2717_v42  ;;  %v1682_v37 = vld [vmem:[#allocation8 + $0x8] sm:$0xff] }
 0x6bf   :  { %v2365_v42 = vpack.c.bf16 %v1682_v37, %v1681_v36 }
 0x6c1   :  { %2331 = vmatpush1.bf16.msra.mxu0 %v2720_v46  ;;  %2363 = vmatpush1.bf16.msra.mxu1 %v2724_v47  ;;  %v2567_v46 = vmov 0.0|0.0   ;;  %v1683_v47 = vld [vmem:[#allocation8 + $0x10] sm:$0xff] }
 0x6c2   :  { %2364 = vmatprep.subr.bf16.mxu0 %v2567_v46  ;;  %v2368_v55 = vpack.c.bf16 %v1684_v54, %v1683_v47 }
 0x777   :  { %v1358_v9 = vpop.f32.mrb[12].mxu0  ;;  %v1429_v13 = vpop.f32.mrb[12].mxu1 }
 0x778   :  { %v1360_v17 = vpop.f32.mrb[13].mxu0  ;;  %v1431_v18 = vpop.f32.mrb[13].mxu1 }
 0x779   :  { %v1438_v22 = vcombine.low %v1358_v9, %v1360_v17  ;;  %v1439_v26 = vcombine.low %v1429_v13, %v1431_v18 }
 0x77b   :  { %v1446_v27 = vrot.slane %v1438_v22, %v2767_v58  ;;  %v1453_v31 = vrot.slane %v1439_v26, %v2767_v58 }
 0x77d   :  { %v1454_v35 = vcombine.low %v1446_v27, %v1453_v31 }
 0x77f   :  { %v1461_v40 = vrot.slane %v1454_v35, %v2767_v58 }
 0x781   :  { %v1463_v44 = vadd.f32 %v1461_v40, %v1291_v39 }
 0x783   :  { %v1797_v51 = vmul.f32 -1.442695, %v1463_v44  ;;  %v1471_v57 = vrot.slane %v1463_v44, 3 }
 0x785   :  { %2448 = vpow2.f32 %v1797_v51  ;;  %v1799_v51 = vld [vmem:[%s3042_s3] ss:$0 sm:$0xff] }
 0x78f   :  { %v2449_v52 = vpop.eup %2448 }
 0x790   :  { %v1467_v53 = vadd.f32 1.0, %v2449_v52 }
 0x792   :  { %2450 = vrcp.f32 %v1467_v53 }
 0x793   :  { %2452 = vtanh.f32 %v1471_v57 }
 0x79c   :  { %v2451_v63 = vpop.eup %2450 }
 0x79d   :  { %v1475_v1 = vrot.slane %v2451_v63, 1  ;;  %v2453_v2 = vpop.eup %2452  ;;  %v1481_v20 = vrot.slane %v2451_v63, 2 }
 0x79e   :  { %v1478_v7 = vmul.f32 %v2453_v2, %v2451_v63 }
 0x79f   :  { %v1477_v16 = vmul.f32 %v1475_v1, %v2977_v45 }
 0x7a1   :  { %v3016_v19 = vadd.f32 %v1478_v7, %v1477_v16 }
 0x7a3   :  { %2454 = vtanh.f32 %v3016_v19 }
 0x7ad   :  { %v2455_v25 = vpop.eup %2454 }
 0x7ae   :  { %v1483_v34 = vmul.f32 %v2455_v25, %v1481_v20 }
 0x7b0   :  { %1484 = vst [vmem:[#allocation2 + $0x6] sm:$0x1] %v1483_v34  ;;  %1552 = vmatmul.mubr.f32.vlgmr.msra.gmra.mrb[14].mxu0 %v1483_v34  ;;  %1623 = vmatmul.mubr.f32.vlgmr.msra.gmra.mrb[14].mxu1 %v1483_v34 }
 0x7b1   :  { %2366 = vmatpush3.bf16.msra.mxu0 %v2365_v42  ;;  %1849 = vmatprep.mubr.msk.f32.mxu0 %vm2568_vm0, %v2565_v0 }
 0x7b2   :  { %2367 = vmatprep.subr.bf16.mxu0 %v2567_v46 }
 0x7b5   :  { %2369 = vmatpush3.bf16.msra.mxu0 %v2368_v55 }
 0x7b6   :  { %2370 = vmatprep.subr.bf16.mxu0 %v2567_v46 }
 0x7b9   :  { %2372 = vmatpush3.bf16.msra.mxu0 %v2371_v60 }
 0x7ba   :  { %2373 = vmatprep.subr.bf16.mxu0 %v2567_v46 }
 0x7bd   :  { %2375 = vmatpush3.bf16.msra.mxu0 %v2374_v3 }
 0x7be   :  { %2376 = vmatprep.subr.bf16.mxu0 %v2567_v46 }
 0x7c1   :  { %2378 = vmatpush3.bf16.msra.mxu0 %v2377_v10 }
 0x7c2   :  { %2379 = vmatprep.subr.bf16.mxu0 %v2567_v46 }
 0x7c5   :  { %2381 = vmatpush3.bf16.msra.mxu0 %v2380_v14 }
 0x7c6   :  { %2382 = vmatprep.subr.bf16.mxu0 %v2567_v46 }
 0x7c9   :  { %2384 = vmatpush3.bf16.msra.mxu0 %v2383_v23 }
 0x7ca   :  { %2385 = vmatprep.subr.bf16.mxu0 %v2567_v46 }
 0x7cd   :  { %2387 = vmatpush3.bf16.msra.mxu0 %v2386_v29 }
 0x883   :  { %v1553_v4 = vpop.f32.mrb[14].mxu0  ;;  %v1624_v30 = vpop.f32.mrb[14].mxu1 }
 0x884   :  { %v1555_v8 = vpop.f32.mrb[15].mxu0  ;;  %v1626_v32 = vpop.f32.mrb[15].mxu1 }
 0x885   :  { %v1633_v33 = vcombine.low %v1553_v4, %v1555_v8  ;;  %v1634_v38 = vcombine.low %v1624_v30, %v1626_v32 }
 0x887   :  { %v1641_v41 = vrot.slane %v1633_v33, %v2767_v58  ;;  %v1648_v43 = vrot.slane %v1634_v38, %v2767_v58 }
 0x889   :  { %v1649_v45 = vcombine.low %v1641_v41, %v1648_v43 }
 0x88b   :  { %v1656_v49 = vrot.slane %v1649_v45, %v2767_v58 }
 0x88d   :  { %v1658_v50 = vadd.f32 %v1656_v49, %v1486_v48 }
 0x88f   :  { %v1798_v0 = vmul.f32 -1.442695, %v1658_v50  ;;  %v1666_v17 = vrot.slane %v1658_v50, 3 }
 0x891   :  { %2456 = vpow2.f32 %v1798_v0 }
 0x89b   :  { %v2457_v9 = vpop.eup %2456 }
 0x89c   :  { %v1662_v13 = vadd.f32 1.0, %v2457_v9 }
 0x89e   :  { %2458 = vrcp.f32 %v1662_v13 }
 0x89f   :  { %2460 = vtanh.f32 %v1666_v17 }
 0x8a8   :  { %v2459_v18 = vpop.eup %2458 }
 0x8a9   :  { %v1670_v22 = vrot.slane %v2459_v18, 1  ;;  %v2461_v26 = vpop.eup %2460  ;;  %v1676_v39 = vrot.slane %v2459_v18, 2 }
 0x8aa   :  { %v1673_v31 = vmul.f32 %v2461_v26, %v2459_v18 }
 0x8ab   :  { %v1672_v27 = vmul.f32 %v1670_v22, %v3016_v19 }
 0x8ad   :  { %v1674_v35 = vadd.f32 %v1673_v31, %v1672_v27 }
 0x8af   :  { %2462 = vtanh.f32 %v1674_v35 }
 0x8b9   :  { %v2463_v40 = vpop.eup %2462 }
 0x8ba   :  { %v1678_v44 = vmul.f32 %v2463_v40, %v1676_v39 }
 0x8bc   :  { %1679 = vst [vmem:[#allocation2 + $0x7] sm:$0x1] %v1678_v44 }
 0x8c3   :  { %v1680_v58 = vld [vmem:[#allocation2] sm:$0xff] }
 0x8c4   :  { %1850 = vmatmul.mubr.f32.vlgmr.msra.gmra.mrb[16].mxu0 %v1680_v58 }
 0x997   :  { %v1770_v52 = vpop.f32.mrb[16].mxu0 }
 0x998   :  { %v1771_v53 = vadd.f32 %v1799_v51, %v1770_v52  ;;  %v1851_v57 = vpop.f32.mrb[17].mxu0 }
 0x99a   :  { %1774 = vst [vmem:[#allocation9] sm:$0xff] %v1771_v53 }
 0x99b   :  { %2541 = shalt.err (!%p2538_p0)
}
 0x99c   :  { %s2542_s7 = scalar_lea.hbm %s3043_s4, 128 }
 0x99d   :  { %p2543_p1 = scmp.ne.s32.totalorder %s3043_s4, %s2542_s7  ;;  %p2546_p2 = scmp.lt.u32.totalorder %s2542_s7, %s3043_s4 }
 0x99f   :  { %p2548_p3 = pnand %p2546_p2, %p2543_p1 }
 0x9a1   :  { %2551 = shalt.err (!%p2548_p3)
}
 0x9a2   :  { %1784 = dma.vmem_to_hbm [thread:$0]  %s1782_s29, 128, %s3043_s4, [#allocation5]  }
 0x9a3   :  { %2556 = dma.done.wait [#allocation5], 128  }
 0x9a4   :  { %2557 = vsyncadd [#allocation5], 4294967168 }
 0x9a5   :  { %1788 = vsyncpa [#allocation4], 1 }
 0x9a6   :  { %1789 = vsyncpa [#allocation7], 1 }
 0x9a7   :  { %1790 = vsyncpa [#allocation5], 1 }

</bundles_post_ra>
